<compile_context>
chip_gen: v7x
topology: tpu7x:2x2x1
jax: 0.10.0
libtpu: 0.0.40
codegen_flags: <defaults>
</compile_context>

<pallas_src>
import functools

import jax
import jax.numpy as jnp
from jax import lax
from jax.experimental import pallas as pl
from jax.experimental.pallas import tpu as pltpu

LANE = 128


def _round_up(x, m):
    return ((x + m - 1) // m) * m


# ---------------------------------------------------------------------------
# Kernels
# ---------------------------------------------------------------------------

def _view_kernel(x_ref, ew1_ref, eb1_ref, ew2_ref, eb2_ref,
                 dw1_ref, db1_ref, dw2_ref, db2_ref,
                 cvt_ref, cvsq_ref,
                 zf_ref, xr_ref, qv_ref, *, alpha, num_clusters):
    """Per-view fused: encoder -> (Z_fused block) -> decoder -> soft assignment."""
    x = x_ref[...]                                                     # (B, d_pad)

    # Encoder: relu(relu(x W1 + b1) W2 + b2)
    h = jnp.dot(x, ew1_ref[...], preferred_element_type=jnp.float32)
    h = jnp.maximum(h + eb1_ref[...], 0.0)                            # (B, 2H)
    z = jnp.dot(h, ew2_ref[...], preferred_element_type=jnp.float32)
    z = jnp.maximum(z + eb2_ref[...], 0.0)                            # (B, h_pad)
    zf_ref[...] = z.astype(zf_ref.dtype)                              # column block v of Z_fused

    # Decoder: relu(z W1 + b1) W2 + b2  (padded latent rows of W1 are zero)
    hd = jnp.dot(z, dw1_ref[...], preferred_element_type=jnp.float32)
    hd = jnp.maximum(hd + db1_ref[...], 0.0)                          # (B, 2H)
    xr = jnp.dot(hd, dw2_ref[...], preferred_element_type=jnp.float32) + db2_ref[...]
    xr_ref[...] = xr.astype(xr_ref.dtype)                             # (B, d_pad)

    # Student-t soft assignment: ||z||^2 - 2 z c^T + ||c||^2, cross term on MXU.
    z_sq = jnp.sum(z * z, axis=-1, keepdims=True)                     # (B, 1)
    cross = jnp.dot(z, cvt_ref[...], preferred_element_type=jnp.float32)  # (B, K_pad)
    dist = z_sq - 2.0 * cross + cvsq_ref[...]                         # (B, K_pad)
    q = 1.0 / (1.0 + dist / alpha)
    exponent = (alpha + 1.0) / 2.0
    if exponent != 1.0:                                               # static: skip pow at alpha == 1
        q = q ** exponent
    k_pad = qv_ref.shape[-1]
    valid = lax.broadcasted_iota(jnp.int32, (1, k_pad), 1) < num_clusters
    q = jnp.where(valid, q, 0.0)
    qv_ref[...] = (q / jnp.sum(q, axis=-1, keepdims=True)).astype(qv_ref.dtype)


def _head_kernel(zf_ref, cft_ref, cfsq_ref, aw1_ref, ab1_ref, aw2_ref, ab2_ref,
                 pf_ref, adv_ref, *, alpha, num_clusters):
    """Fused-latent cluster assignment + adversarial head (Z_fused read once)."""
    zf = zf_ref[...]                                                  # (B, T_pad)

    z_sq = jnp.sum(zf * zf, axis=-1, keepdims=True)
    cross = jnp.dot(zf, cft_ref[...], preferred_element_type=jnp.float32)  # (B, K_pad)
    dist = z_sq - 2.0 * cross + cfsq_ref[...]
    q = 1.0 / (1.0 + dist / alpha)
    exponent = (alpha + 1.0) / 2.0
    if exponent != 1.0:
        q = q ** exponent
    k_pad = pf_ref.shape[-1]
    valid = lax.broadcasted_iota(jnp.int32, (1, k_pad), 1) < num_clusters
    q = jnp.where(valid, q, 0.0)
    pf_ref[...] = (q / jnp.sum(q, axis=-1, keepdims=True)).astype(pf_ref.dtype)

    # Adversarial head, eval-mode forward (Dropout = identity; GRL only touches grads).
    # TODO(synk): training-mode Dropout(0.1) and the gradient-reversal hook
    # (grl_hook / calc_coeff / iter_num) are train/backward-only; not part of
    # this forward kernel.
    h = jnp.dot(zf, aw1_ref[...], preferred_element_type=jnp.float32)
    h = jnp.maximum(h + ab1_ref[...], 0.0)
    adv = jnp.dot(h, aw2_ref[...], preferred_element_type=jnp.float32) + ab2_ref[...]
    adv_ref[...] = adv.astype(adv_ref.dtype)


# ---------------------------------------------------------------------------
# pallas_call wrappers
# ---------------------------------------------------------------------------

def _per_view_call(Xp, p, *, alpha, num_clusters):
    V, B, d_pad = Xp.shape
    H2 = p["enc_w1"].shape[2]
    h_pad = p["enc_w2"].shape[2]
    K_pad = p["centers_views_t"].shape[2]
    kernel = functools.partial(_view_kernel, alpha=alpha, num_clusters=num_clusters)
    return pl.pallas_call(
        kernel,
        out_shape=(
            jax.ShapeDtypeStruct((B, V * h_pad), Xp.dtype),   # Z_fused (padded layout)
            jax.ShapeDtypeStruct((V, B, d_pad), Xp.dtype),    # reconstructions
            jax.ShapeDtypeStruct((V, B, K_pad), Xp.dtype),    # per-view soft assignments
        ),
        grid=(V,),
        in_specs=[
            pl.BlockSpec((None, B, d_pad), lambda v: (v, 0, 0)),
            pl.BlockSpec((None, d_pad, H2), lambda v: (v, 0, 0)),
            pl.BlockSpec((None, 1, H2), lambda v: (v, 0, 0)),
            pl.BlockSpec((None, H2, h_pad), lambda v: (v, 0, 0)),
            pl.BlockSpec((None, 1, h_pad), lambda v: (v, 0, 0)),
            pl.BlockSpec((None, h_pad, H2), lambda v: (v, 0, 0)),
            pl.BlockSpec((None, 1, H2), lambda v: (v, 0, 0)),
            pl.BlockSpec((None, H2, d_pad), lambda v: (v, 0, 0)),
            pl.BlockSpec((None, 1, d_pad), lambda v: (v, 0, 0)),
            pl.BlockSpec((None, h_pad, K_pad), lambda v: (v, 0, 0)),
            pl.BlockSpec((None, 1, K_pad), lambda v: (v, 0, 0)),
        ],
        out_specs=(
            pl.BlockSpec((B, h_pad), lambda v: (0, v)),        # column block v of Z_fused
            pl.BlockSpec((None, B, d_pad), lambda v: (v, 0, 0)),
            pl.BlockSpec((None, B, K_pad), lambda v: (v, 0, 0)),
        ),
        compiler_params=pltpu.CompilerParams(
            dimension_semantics=("parallel",)),
    )(Xp, p["enc_w1"], p["enc_b1"], p["enc_w2"], p["enc_b2"],
      p["dec_w1"], p["dec_b1"], p["dec_w2"], p["dec_b2"],
      p["centers_views_t"], p["centers_views_sq"])


def _head_call(Zf, p, *, alpha, num_clusters):
    B, T_pad = Zf.shape
    K_pad = p["centers_fused_t"].shape[1]
    hs = p["adv_w1"].shape[1]
    g_pad = p["adv_w2"].shape[1]
    kernel = functools.partial(_head_kernel, alpha=alpha, num_clusters=num_clusters)
    return pl.pallas_call(
        kernel,
        out_shape=(
            jax.ShapeDtypeStruct((B, K_pad), Zf.dtype),
            jax.ShapeDtypeStruct((B, g_pad), Zf.dtype),
        ),
        grid=(1,),
        in_specs=[
            pl.BlockSpec((B, T_pad), lambda i: (0, 0)),
            pl.BlockSpec((T_pad, K_pad), lambda i: (0, 0)),
            pl.BlockSpec((1, K_pad), lambda i: (0, 0)),
            pl.BlockSpec((T_pad, hs), lambda i: (0, 0)),
            pl.BlockSpec((1, hs), lambda i: (0, 0)),
            pl.BlockSpec((hs, g_pad), lambda i: (0, 0)),
            pl.BlockSpec((1, g_pad), lambda i: (0, 0)),
        ],
        out_specs=(
            pl.BlockSpec((B, K_pad), lambda i: (0, 0)),
            pl.BlockSpec((B, g_pad), lambda i: (0, 0)),
        ),
        compiler_params=pltpu.CompilerParams(
            dimension_semantics=("arbitrary",)),
    )(Zf, p["centers_fused_t"], p["centers_fused_sq"],
      p["adv_w1"], p["adv_b1"], p["adv_w2"], p["adv_b2"])


# ---------------------------------------------------------------------------
# Parameters
# ---------------------------------------------------------------------------

def init_multiview_dfc_params(key, input_dims, hidden_dim, num_clusters,
                              hidden_size, num_groups, dtype=jnp.float32):
    """Raw (unpadded) parameters mirroring the PyTorch init schemes."""
    H = hidden_dim
    V = len(input_dims)
    T = H * V

    def linear(k, fan_in, fan_out):                 # nn.Linear default init
        kw, kb = jax.random.split(k)
        bound = 1.0 / jnp.sqrt(float(fan_in))
        w = jax.random.uniform(kw, (fan_in, fan_out), minval=-bound, maxval=bound, dtype=dtype)
        b = jax.random.uniform(kb, (1, fan_out), minval=-bound, maxval=bound, dtype=dtype)
        return w, b

    def xavier(k, fan_in, fan_out):                 # AdversarialNetwork init_weights
        bound = jnp.sqrt(6.0 / float(fan_in + fan_out))
        w = jax.random.uniform(k, (fan_in, fan_out), minval=-bound, maxval=bound, dtype=dtype)
        b = jnp.zeros((1, fan_out), dtype=dtype)
        return w, b

    raw = {"enc": [], "dec": []}
    for d in input_dims:
        key, k1, k2, k3, k4 = jax.random.split(key, 5)
        raw["enc"].append((*linear(k1, d, 2 * H), *linear(k2, 2 * H, H)))
        raw["dec"].append((*linear(k3, H, 2 * H), *linear(k4, 2 * H, d)))

    key, kf, kv, ka1, ka2 = jax.random.split(key, 5)
    raw["centers_fused"] = jax.random.normal(kf, (num_clusters, T), dtype=dtype)
    raw["centers_views"] = jax.random.normal(kv, (V, num_clusters, H), dtype=dtype)
    raw["adv"] = (*xavier(ka1, T, hidden_size), *xavier(ka2, hidden_size, num_groups))
    return raw


def pack_multiview_dfc_params(raw, input_dims, hidden_dim):
    """Zero-pad ragged dims to lane-dense widths, transpose centers for MXU use."""
    H = hidden_dim
    V = len(input_dims)
    d_pad = _round_up(max(input_dims), LANE)
    h_pad = _round_up(H, LANE)
    dtype = raw["centers_fused"].dtype

    def pad_to(a, shape):
        return jnp.pad(a, [(0, s - d) for d, s in zip(a.shape, shape)])

    enc_w1 = jnp.stack([pad_to(w1, (d_pad, 2 * H)) for (w1, _, _, _) in raw["enc"]])
    enc_b1 = jnp.stack([b1 for (_, b1, _, _) in raw["enc"]])
    enc_w2 = jnp.stack([pad_to(w2, (2 * H, h_pad)) for (_, _, w2, _) in raw["enc"]])
    enc_b2 = jnp.stack([pad_to(b2, (1, h_pad)) for (_, _, _, b2) in raw["enc"]])

    dec_w1 = jnp.stack([pad_to(w1, (h_pad, 2 * H)) for (w1, _, _, _) in raw["dec"]])
    dec_b1 = jnp.stack([b1 for (_, b1, _, _) in raw["dec"]])
    dec_w2 = jnp.stack([pad_to(w2, (2 * H, d_pad)) for (_, _, w2, _) in raw["dec"]])
    dec_b2 = jnp.stack([pad_to(b2, (1, d_pad)) for (_, _, _, b2) in raw["dec"]])

    # Per-view centers: pre-transposed (h_pad, K_pad) so the distance cross term
    # is a plain z @ C on the MXU; precomputed squared norms.
    cv = raw["centers_views"]                                   # (V, K, H)
    K = cv.shape[1]
    K_pad = _round_up(K, LANE)
    centers_views_t = pad_to(jnp.transpose(cv, (0, 2, 1)), (V, h_pad, K_pad))
    centers_views_sq = pad_to(jnp.sum(cv * cv, axis=-1), (V, K_pad))[:, None, :]

    # Fused centers / adv_w1: laid out in the padded Z_fused row layout
    # (view v occupies rows [v*h_pad, v*h_pad+H)); padded rows are exactly zero.
    cf = raw["centers_fused"]                                   # (K, T)
    T_pad = V * h_pad
    cft = jnp.zeros((T_pad, K_pad), dtype)
    for v in range(V):
        cft = cft.at[v * h_pad:v * h_pad + H, :K].set(cf[:, v * H:(v + 1) * H].T)
    centers_fused_sq = pad_to(jnp.sum(cf * cf, axis=-1)[None, :], (1, K_pad))

    aw1, ab1, aw2, ab2 = raw["adv"]
    hs = aw1.shape[1]
    aw1p = jnp.zeros((T_pad, hs), dtype)
    for v in range(V):
        aw1p = aw1p.at[v * h_pad:v * h_pad + H, :].set(aw1[v * H:(v + 1) * H, :])
    g_pad = _round_up(aw2.shape[1], LANE)
    adv_w2 = pad_to(aw2, (hs, g_pad))
    adv_b2 = pad_to(ab2, (1, g_pad))

    return {
        "enc_w1": enc_w1, "enc_b1": enc_b1, "enc_w2": enc_w2, "enc_b2": enc_b2,
        "dec_w1": dec_w1, "dec_b1": dec_b1, "dec_w2": dec_w2, "dec_b2": dec_b2,
        "centers_views_t": centers_views_t, "centers_views_sq": centers_views_sq,
        "centers_fused_t": cft, "centers_fused_sq": centers_fused_sq,
        "adv_w1": aw1p, "adv_b1": ab1, "adv_w2": adv_w2, "adv_b2": adv_b2,
    }


def pack_multiview_dfc_inputs(X, input_dims, dtype=jnp.float32):
    """Stack ragged per-view inputs into a (V, B, d_pad) lane-dense array.

    Hoisted out of the jitted forward so the padded copy is made once, not
    per step.
    """
    d_pad = _round_up(max(input_dims), LANE)
    return jnp.stack([jnp.pad(x.astype(dtype), ((0, 0), (0, d_pad - x.shape[1])))
                      for x in X])


# ---------------------------------------------------------------------------
# Full MultiViewDFC forward (single jit, two pallas_calls)
# ---------------------------------------------------------------------------

def build_multiview_dfc_forward(input_dims, hidden_dim, num_clusters, num_groups,
                                alpha=1.0):
    input_dims = tuple(int(d) for d in input_dims)
    H = int(hidden_dim)
    V = len(input_dims)
    K = int(num_clusters)
    G = int(num_groups)

    @jax.jit
    def forward(params, Xp):
        B = Xp.shape[1]
        h_pad = params["enc_w2"].shape[2]

        # Per-view fused kernel: encoder -> Z_fused block -> decoder -> per-view q.
        Zf_pad, Xr, Qv = _per_view_call(Xp, params, alpha=alpha, num_clusters=K)

        # Fused-latent cluster assignment + adversarial head (one kernel).
        Pf_pad, adv_pad = _head_call(Zf_pad, params, alpha=alpha, num_clusters=K)

        # Output formatting only (padded lanes are exact zeros).
        Z_fused = Zf_pad.reshape(B, V, h_pad)[:, :, :H].reshape(B, V * H)
        P_fused = Pf_pad[:, :K]
        adv_out = adv_pad[:, :G]
        P_views = [Qv[v, :, :K] for v in range(V)]
        X_recon = [Xr[v, :, :d] for v, d in enumerate(input_dims)]
        return P_fused, P_views, Z_fused, adv_out, X_recon

    return forward


# ---------------------------------------------------------------------------
# Pure-JAX reference (unpadded params) for correctness checking
# ---------------------------------------------------------------------------

def _reference_forward(raw, X, alpha):
    def mlp(x, w1, b1, w2, b2, final_relu):
        h = jnp.maximum(jnp.dot(x, w1, precision="highest") + b1, 0.0)
        o = jnp.dot(h, w2, precision="highest") + b2
        return jnp.maximum(o, 0.0) if final_relu else o

    Z = [mlp(x, *p, final_relu=True) for x, p in zip(X, raw["enc"])]
    X_recon = [mlp(z, *p, final_relu=False) for z, p in zip(Z, raw["dec"])]
    Z_fused = jnp.concatenate(Z, axis=1)

    def soft_assign(z, centers):
        dist = jnp.sum((z[:, None, :] - centers[None, :, :]) ** 2, axis=2)
        q = 1.0 / (1.0 + dist / alpha)
        q = q ** ((alpha + 1.0) / 2.0)
        return q / jnp.sum(q, axis=1, keepdims=True)

    P_fused = soft_assign(Z_fused, raw["centers_fused"])
    P_views = [soft_assign(z, raw["centers_views"][i]) for i, z in enumerate(Z)]
    aw1, ab1, aw2, ab2 = raw["adv"]
    adv_out = jnp.dot(jnp.maximum(jnp.dot(Z_fused, aw1, precision="highest") + ab1, 0.0),
                      aw2, precision="highest") + ab2
    return P_fused, P_views, Z_fused, adv_out, X_recon


if __name__ == "__main__":
    key = jax.random.PRNGKey(0)
    batch = 2
    hidden_dim = 32
    input_dims = [16, 48, 24]
    num_clusters = 5
    hidden_size = 64
    num_groups = 3
    alpha = 1.0

    kp, kx = jax.random.split(key)
    raw = init_multiview_dfc_params(kp, input_dims, hidden_dim, num_clusters,
                                    hidden_size, num_groups)
    params = pack_multiview_dfc_params(raw, input_dims, hidden_dim)
    forward = build_multiview_dfc_forward(input_dims, hidden_dim, num_clusters,
                                          num_groups, alpha=alpha)

    x_keys = jax.random.split(kx, len(input_dims))
    X = [jax.random.normal(k, (batch, d), dtype=jnp.float32)
         for k, d in zip(x_keys, input_dims)]
    Xp = pack_multiview_dfc_inputs(X, input_dims)          # hoisted out of jit

    P_fused, P_views, Z_fused, adv_out, X_recon = forward(params, Xp)
    jax.block_until_ready((P_fused, P_views, Z_fused, adv_out, X_recon))

    # sanity-check against a plain-JAX reference of the PyTorch forward
    rP_fused, rP_views, rZ_fused, radv, rX_recon = _reference_forward(raw, X, alpha)

    def close(a, b):
        return bool(jnp.allclose(a, b, atol=1e-4, rtol=1e-4))

    assert P_fused.shape == (batch, num_clusters) and close(P_fused, rP_fused)
    assert Z_fused.shape == (batch, hidden_dim * len(input_dims)) and close(Z_fused, rZ_fused)
    assert adv_out.shape == (batch, num_groups) and close(adv_out, radv)
    for pv, rpv in zip(P_views, rP_views):
        assert pv.shape == (batch, num_clusters) and close(pv, rpv)
    for xr, rxr, d in zip(X_recon, rX_recon, input_dims):
        assert xr.shape == (batch, d) and close(xr, rxr)

    print("KERNEL_OK")
</pallas_src>

<mosaic_0001>
module attributes {stable_mosaic.version = 11 : i64} {
  func.func @_view_kernel(%arg0: i32, %arg1: memref<1x2x128xf32, #tpu.memory_space<vmem>>, %arg2: memref<1x128x64xf32, #tpu.memory_space<vmem>>, %arg3: memref<1x1x64xf32, #tpu.memory_space<vmem>>, %arg4: memref<1x64x128xf32, #tpu.memory_space<vmem>>, %arg5: memref<1x1x128xf32, #tpu.memory_space<vmem>>, %arg6: memref<1x128x64xf32, #tpu.memory_space<vmem>>, %arg7: memref<1x1x64xf32, #tpu.memory_space<vmem>>, %arg8: memref<1x64x128xf32, #tpu.memory_space<vmem>>, %arg9: memref<1x1x128xf32, #tpu.memory_space<vmem>>, %arg10: memref<1x128x128xf32, #tpu.memory_space<vmem>>, %arg11: memref<1x1x128xf32, #tpu.memory_space<vmem>>, %arg12: memref<2x128xf32, #tpu.memory_space<vmem>>, %arg13: memref<1x2x128xf32, #tpu.memory_space<vmem>>, %arg14: memref<1x2x128xf32, #tpu.memory_space<vmem>>) attributes {dimension_semantics = [#tpu.dimension_semantics<parallel>], iteration_bounds = array<i64: 3>, scalar_prefetch = 0 : i64, scratch_operands = 0 : i64, tpu.core_type = #tpu.core_type<tc>, window_params = [{transform_indices = @transform_0, window_bounds = array<i64: 1, 2, 128>}, {transform_indices = @transform_1, window_bounds = array<i64: 1, 128, 64>}, {transform_indices = @transform_2, window_bounds = array<i64: 1, 1, 64>}, {transform_indices = @transform_3, window_bounds = array<i64: 1, 64, 128>}, {transform_indices = @transform_4, window_bounds = array<i64: 1, 1, 128>}, {transform_indices = @transform_5, window_bounds = array<i64: 1, 128, 64>}, {transform_indices = @transform_6, window_bounds = array<i64: 1, 1, 64>}, {transform_indices = @transform_7, window_bounds = array<i64: 1, 64, 128>}, {transform_indices = @transform_8, window_bounds = array<i64: 1, 1, 128>}, {transform_indices = @transform_9, window_bounds = array<i64: 1, 128, 128>}, {transform_indices = @transform_10, window_bounds = array<i64: 1, 1, 128>}, {transform_indices = @transform_11, window_bounds = array<i64: 2, 128>}, {transform_indices = @transform_12, window_bounds = array<i64: 1, 2, 128>}, {transform_indices = @transform_13, window_bounds = array<i64: 1, 2, 128>}]} {
    %c0 = arith.constant 0 : index
    %c0_0 = arith.constant 0 : index
    %c0_1 = arith.constant 0 : index
    %0 = vector.load %arg1[%c0, %c0_0, %c0_1] : memref<1x2x128xf32, #tpu.memory_space<vmem>>, vector<1x2x128xf32>
    %1 = vector.shape_cast %0 : vector<1x2x128xf32> to vector<2x128xf32>
    %c0_2 = arith.constant 0 : index
    %c0_3 = arith.constant 0 : index
    %c0_4 = arith.constant 0 : index
    %2 = vector.load %arg2[%c0_2, %c0_3, %c0_4] : memref<1x128x64xf32, #tpu.memory_space<vmem>>, vector<1x128x64xf32>
    %3 = vector.shape_cast %2 : vector<1x128x64xf32> to vector<128x64xf32>
    %cst = arith.constant dense<0.000000e+00> : vector<2x64xf32>
    %4 = tpu.matmul %1, %3, %cst {dimension_numbers = #tpu.dot_dimension_numbers<[1], [0], [0], [1], [0, 0, 1, 1], [], []>} : vector<2x128xf32>, vector<128x64xf32>, vector<2x64xf32> -> vector<2x64xf32>
    %c0_5 = arith.constant 0 : index
    %c0_6 = arith.constant 0 : index
    %c0_7 = arith.constant 0 : index
    %5 = vector.load %arg3[%c0_5, %c0_6, %c0_7] : memref<1x1x64xf32, #tpu.memory_space<vmem>>, vector<1x1x64xf32>
    %6 = vector.shape_cast %5 : vector<1x1x64xf32> to vector<1x64xf32>
    %7 = vector.broadcast %6 : vector<1x64xf32> to vector<2x64xf32>
    %8 = arith.addf %4, %7 : vector<2x64xf32>
    %cst_8 = arith.constant 0.000000e+00 : f32
    %9 = vector.broadcast %cst_8 : f32 to vector<2x64xf32>
    %10 = arith.maximumf %8, %9 : vector<2x64xf32>
    %c0_9 = arith.constant 0 : index
    %c0_10 = arith.constant 0 : index
    %c0_11 = arith.constant 0 : index
    %11 = vector.load %arg4[%c0_9, %c0_10, %c0_11] : memref<1x64x128xf32, #tpu.memory_space<vmem>>, vector<1x64x128xf32>
    %12 = vector.shape_cast %11 : vector<1x64x128xf32> to vector<64x128xf32>
    %cst_12 = arith.constant dense<0.000000e+00> : vector<2x128xf32>
    %13 = tpu.matmul %10, %12, %cst_12 {dimension_numbers = #tpu.dot_dimension_numbers<[1], [0], [0], [1], [0, 0, 1, 1], [], []>} : vector<2x64xf32>, vector<64x128xf32>, vector<2x128xf32> -> vector<2x128xf32>
    %c0_13 = arith.constant 0 : index
    %c0_14 = arith.constant 0 : index
    %c0_15 = arith.constant 0 : index
    %14 = vector.load %arg5[%c0_13, %c0_14, %c0_15] : memref<1x1x128xf32, #tpu.memory_space<vmem>>, vector<1x1x128xf32>
    %15 = vector.shape_cast %14 : vector<1x1x128xf32> to vector<1x128xf32>
    %16 = vector.broadcast %15 : vector<1x128xf32> to vector<2x128xf32>
    %17 = arith.addf %13, %16 : vector<2x128xf32>
    %cst_16 = arith.constant 0.000000e+00 : f32
    %18 = vector.broadcast %cst_16 : f32 to vector<2x128xf32>
    %19 = arith.maximumf %17, %18 : vector<2x128xf32>
    %c0_17 = arith.constant 0 : index
    %c0_18 = arith.constant 0 : index
    %20 = vector.load %arg12[%c0_17, %c0_18] : memref<2x128xf32, #tpu.memory_space<vmem>>, vector<2x128xf32>
    tpu.vector_store %arg12[%c0_17, %c0_18], %19 {strides = array<i32>} : memref<2x128xf32, #tpu.memory_space<vmem>>, vector<2x128xf32>,
    %c0_19 = arith.constant 0 : index
    %c0_20 = arith.constant 0 : index
    %c0_21 = arith.constant 0 : index
    %21 = vector.load %arg6[%c0_19, %c0_20, %c0_21] : memref<1x128x64xf32, #tpu.memory_space<vmem>>, vector<1x128x64xf32>
    %22 = vector.shape_cast %21 : vector<1x128x64xf32> to vector<128x64xf32>
    %cst_22 = arith.constant dense<0.000000e+00> : vector<2x64xf32>
    %23 = tpu.matmul %19, %22, %cst_22 {dimension_numbers = #tpu.dot_dimension_numbers<[1], [0], [0], [1], [0, 0, 1, 1], [], []>} : vector<2x128xf32>, vector<128x64xf32>, vector<2x64xf32> -> vector<2x64xf32>
    %c0_23 = arith.constant 0 : index
    %c0_24 = arith.constant 0 : index
    %c0_25 = arith.constant 0 : index
    %24 = vector.load %arg7[%c0_23, %c0_24, %c0_25] : memref<1x1x64xf32, #tpu.memory_space<vmem>>, vector<1x1x64xf32>
    %25 = vector.shape_cast %24 : vector<1x1x64xf32> to vector<1x64xf32>
    %26 = vector.broadcast %25 : vector<1x64xf32> to vector<2x64xf32>
    %27 = arith.addf %23, %26 : vector<2x64xf32>
    %cst_26 = arith.constant 0.000000e+00 : f32
    %28 = vector.broadcast %cst_26 : f32 to vector<2x64xf32>
    %29 = arith.maximumf %27, %28 : vector<2x64xf32>
    %c0_27 = arith.constant 0 : index
    %c0_28 = arith.constant 0 : index
    %c0_29 = arith.constant 0 : index
    %30 = vector.load %arg8[%c0_27, %c0_28, %c0_29] : memref<1x64x128xf32, #tpu.memory_space<vmem>>, vector<1x64x128xf32>
    %31 = vector.shape_cast %30 : vector<1x64x128xf32> to vector<64x128xf32>
    %cst_30 = arith.constant dense<0.000000e+00> : vector<2x128xf32>
    %32 = tpu.matmul %29, %31, %cst_30 {dimension_numbers = #tpu.dot_dimension_numbers<[1], [0], [0], [1], [0, 0, 1, 1], [], []>} : vector<2x64xf32>, vector<64x128xf32>, vector<2x128xf32> -> vector<2x128xf32>
    %c0_31 = arith.constant 0 : index
    %c0_32 = arith.constant 0 : index
    %c0_33 = arith.constant 0 : index
    %33 = vector.load %arg9[%c0_31, %c0_32, %c0_33] : memref<1x1x128xf32, #tpu.memory_space<vmem>>, vector<1x1x128xf32>
    %34 = vector.shape_cast %33 : vector<1x1x128xf32> to vector<1x128xf32>
    %35 = vector.broadcast %34 : vector<1x128xf32> to vector<2x128xf32>
    %36 = arith.addf %32, %35 : vector<2x128xf32>
    %c0_34 = arith.constant 0 : index
    %c0_35 = arith.constant 0 : index
    %c0_36 = arith.constant 0 : index
    %37 = vector.load %arg13[%c0_34, %c0_35, %c0_36] : memref<1x2x128xf32, #tpu.memory_space<vmem>>, vector<1x2x128xf32>
    %38 = vector.shape_cast %37 : vector<1x2x128xf32> to vector<2x128xf32>
    %39 = vector.shape_cast %36 : vector<2x128xf32> to vector<1x2x128xf32>
    tpu.vector_store %arg13[%c0_34, %c0_35, %c0_36], %39 {strides = array<i32>} : memref<1x2x128xf32, #tpu.memory_space<vmem>>, vector<1x2x128xf32>,
    %40 = arith.mulf %19, %19 : vector<2x128xf32>
    %cst_37 = arith.constant dense<0.000000e+00> : vector<2xf32>
    %41 = vector.multi_reduction <add>, %40, %cst_37 [1] : vector<2x128xf32> to vector<2xf32>
    %42 = vector.shape_cast %41 : vector<2xf32> to vector<2x1xf32>
    %c0_38 = arith.constant 0 : index
    %c0_39 = arith.constant 0 : index
    %c0_40 = arith.constant 0 : index
    %43 = vector.load %arg10[%c0_38, %c0_39, %c0_40] : memref<1x128x128xf32, #tpu.memory_space<vmem>>, vector<1x128x128xf32>
    %44 = vector.shape_cast %43 : vector<1x128x128xf32> to vector<128x128xf32>
    %cst_41 = arith.constant dense<0.000000e+00> : vector<2x128xf32>
    %45 = tpu.matmul %19, %44, %cst_41 {dimension_numbers = #tpu.dot_dimension_numbers<[1], [0], [0], [1], [0, 0, 1, 1], [], []>} : vector<2x128xf32>, vector<128x128xf32>, vector<2x128xf32> -> vector<2x128xf32>
    %cst_42 = arith.constant 2.000000e+00 : f32
    %46 = vector.broadcast %cst_42 : f32 to vector<2x128xf32>
    %47 = arith.mulf %46, %45 : vector<2x128xf32>
    %48 = vector.broadcast %42 : vector<2x1xf32> to vector<2x128xf32>
    %49 = arith.subf %48, %47 : vector<2x128xf32>
    %c0_43 = arith.constant 0 : index
    %c0_44 = arith.constant 0 : index
    %c0_45 = arith.constant 0 : index
    %50 = vector.load %arg11[%c0_43, %c0_44, %c0_45] : memref<1x1x128xf32, #tpu.memory_space<vmem>>, vector<1x1x128xf32>
    %51 = vector.shape_cast %50 : vector<1x1x128xf32> to vector<1x128xf32>
    %52 = vector.broadcast %51 : vector<1x128xf32> to vector<2x128xf32>
    %53 = arith.addf %49, %52 : vector<2x128xf32>
    %cst_46 = arith.constant 1.000000e+00 : f32
    %54 = vector.broadcast %cst_46 : f32 to vector<2x128xf32>
    %55 = arith.divf %53, %54 : vector<2x128xf32>
    %cst_47 = arith.constant 1.000000e+00 : f32
    %56 = vector.broadcast %cst_47 : f32 to vector<2x128xf32>
    %57 = arith.addf %56, %55 : vector<2x128xf32>
    %cst_48 = arith.constant 1.000000e+00 : f32
    %58 = vector.broadcast %cst_48 : f32 to vector<2x128xf32>
    %59 = arith.divf %58, %57 : vector<2x128xf32>
    %60 = tpu.iota {dimensions = array<i32: 1>} : vector<1x128xi32>
    %c5_i32 = arith.constant 5 : i32
    %61 = vector.broadcast %c5_i32 : i32 to vector<1x128xi32>
    %62 = arith.cmpi slt, %60, %61 : vector<1x128xi32>
    %cst_49 = arith.constant 0.000000e+00 : f32
    %63 = vector.shape_cast %62 : vector<1x128xi1> to vector<1x128xi1>
    %64 = vector.broadcast %63 : vector<1x128xi1> to vector<2x128xi1>
    %65 = vector.broadcast %cst_49 : f32 to vector<2x128xf32>
    %66 = arith.select %64, %59, %65 : vector<2x128xi1>, vector<2x128xf32>
    %cst_50 = arith.constant dense<0.000000e+00> : vector<2xf32>
    %67 = vector.multi_reduction <add>, %66, %cst_50 [1] : vector<2x128xf32> to vector<2xf32>
    %68 = vector.shape_cast %67 : vector<2xf32> to vector<2x1xf32>
    %69 = vector.broadcast %68 : vector<2x1xf32> to vector<2x128xf32>
    %70 = arith.divf %66, %69 : vector<2x128xf32>
    %c0_51 = arith.constant 0 : index
    %c0_52 = arith.constant 0 : index
    %c0_53 = arith.constant 0 : index
    %71 = vector.load %arg14[%c0_51, %c0_52, %c0_53] : memref<1x2x128xf32, #tpu.memory_space<vmem>>, vector<1x2x128xf32>
    %72 = vector.shape_cast %71 : vector<1x2x128xf32> to vector<2x128xf32>
    %73 = vector.shape_cast %70 : vector<2x128xf32> to vector<1x2x128xf32>
    tpu.vector_store %arg14[%c0_51, %c0_52, %c0_53], %73 {strides = array<i32>} : memref<1x2x128xf32, #tpu.memory_space<vmem>>, vector<1x2x128xf32>,
    return
  }
  func.func @transform_0(%arg0: i32) -> (i32, i32, i32) {
    %c0_i32 = arith.constant 0 : i32
    %c0_i32_0 = arith.constant 0 : i32
    %c0_i32_1 = arith.constant 0 : i32
    return %arg0, %c0_i32, %c0_i32_0 : i32, i32, i32
  }
  func.func @transform_1(%arg0: i32) -> (i32, i32, i32) {
    %c0_i32 = arith.constant 0 : i32
    %c0_i32_0 = arith.constant 0 : i32
    %c0_i32_1 = arith.constant 0 : i32
    return %arg0, %c0_i32, %c0_i32_0 : i32, i32, i32
  }
  func.func @transform_2(%arg0: i32) -> (i32, i32, i32) {
    %c0_i32 = arith.constant 0 : i32
    %c0_i32_0 = arith.constant 0 : i32
    %c0_i32_1 = arith.constant 0 : i32
    return %arg0, %c0_i32, %c0_i32_0 : i32, i32, i32
  }
  func.func @transform_3(%arg0: i32) -> (i32, i32, i32) {
    %c0_i32 = arith.constant 0 : i32
    %c0_i32_0 = arith.constant 0 : i32
    %c0_i32_1 = arith.constant 0 : i32
    return %arg0, %c0_i32, %c0_i32_0 : i32, i32, i32
  }
  func.func @transform_4(%arg0: i32) -> (i32, i32, i32) {
    %c0_i32 = arith.constant 0 : i32
    %c0_i32_0 = arith.constant 0 : i32
    %c0_i32_1 = arith.constant 0 : i32
    return %arg0, %c0_i32, %c0_i32_0 : i32, i32, i32
  }
  func.func @transform_5(%arg0: i32) -> (i32, i32, i32) {
    %c0_i32 = arith.constant 0 : i32
    %c0_i32_0 = arith.constant 0 : i32
    %c0_i32_1 = arith.constant 0 : i32
    return %arg0, %c0_i32, %c0_i32_0 : i32, i32, i32
  }
  func.func @transform_6(%arg0: i32) -> (i32, i32, i32) {
    %c0_i32 = arith.constant 0 : i32
    %c0_i32_0 = arith.constant 0 : i32
    %c0_i32_1 = arith.constant 0 : i32
    return %arg0, %c0_i32, %c0_i32_0 : i32, i32, i32
  }
  func.func @transform_7(%arg0: i32) -> (i32, i32, i32) {
    %c0_i32 = arith.constant 0 : i32
    %c0_i32_0 = arith.constant 0 : i32
    %c0_i32_1 = arith.constant 0 : i32
    return %arg0, %c0_i32, %c0_i32_0 : i32, i32, i32
  }
  func.func @transform_8(%arg0: i32) -> (i32, i32, i32) {
    %c0_i32 = arith.constant 0 : i32
    %c0_i32_0 = arith.constant 0 : i32
    %c0_i32_1 = arith.constant 0 : i32
    return %arg0, %c0_i32, %c0_i32_0 : i32, i32, i32
  }
  func.func @transform_9(%arg0: i32) -> (i32, i32, i32) {
    %c0_i32 = arith.constant 0 : i32
    %c0_i32_0 = arith.constant 0 : i32
    %c0_i32_1 = arith.constant 0 : i32
    return %arg0, %c0_i32, %c0_i32_0 : i32, i32, i32
  }
  func.func @transform_10(%arg0: i32) -> (i32, i32, i32) {
    %c0_i32 = arith.constant 0 : i32
    %c0_i32_0 = arith.constant 0 : i32
    %c0_i32_1 = arith.constant 0 : i32
    return %arg0, %c0_i32, %c0_i32_0 : i32, i32, i32
  }
  func.func @transform_11(%arg0: i32) -> (i32, i32) {
    %c0_i32 = arith.constant 0 : i32
    %c0_i32_0 = arith.constant 0 : i32
    return %c0_i32, %arg0 : i32, i32
  }
  func.func @transform_12(%arg0: i32) -> (i32, i32, i32) {
    %c0_i32 = arith.constant 0 : i32
    %c0_i32_0 = arith.constant 0 : i32
    %c0_i32_1 = arith.constant 0 : i32
    return %arg0, %c0_i32, %c0_i32_0 : i32, i32, i32
  }
  func.func @transform_13(%arg0: i32) -> (i32, i32, i32) {
    %c0_i32 = arith.constant 0 : i32
    %c0_i32_0 = arith.constant 0 : i32
    %c0_i32_1 = arith.constant 0 : i32
    return %arg0, %c0_i32, %c0_i32_0 : i32, i32, i32
  }
}

module attributes {stable_mosaic.version = 11 : i64} {
  func.func @_head_kernel(%arg0: i32, %arg1: memref<2x384xf32, #tpu.memory_space<vmem>>, %arg2: memref<384x128xf32, #tpu.memory_space<vmem>>, %arg3: memref<1x128xf32, #tpu.memory_space<vmem>>, %arg4: memref<384x64xf32, #tpu.memory_space<vmem>>, %arg5: memref<1x64xf32, #tpu.memory_space<vmem>>, %arg6: memref<64x128xf32, #tpu.memory_space<vmem>>, %arg7: memref<1x128xf32, #tpu.memory_space<vmem>>, %arg8: memref<2x128xf32, #tpu.memory_space<vmem>>, %arg9: memref<2x128xf32, #tpu.memory_space<vmem>>) attributes {dimension_semantics = [#tpu.dimension_semantics<arbitrary>], iteration_bounds = array<i64: 1>, scalar_prefetch = 0 : i64, scratch_operands = 0 : i64, tpu.core_type = #tpu.core_type<tc>, window_params = [{pipeline_mode = #tpu.pipeline_mode<synchronous>, transform_indices = @transform_0, window_bounds = array<i64: 2, 384>}, {pipeline_mode = #tpu.pipeline_mode<synchronous>, transform_indices = @transform_1, window_bounds = array<i64: 384, 128>}, {pipeline_mode = #tpu.pipeline_mode<synchronous>, transform_indices = @transform_2, window_bounds = array<i64: 1, 128>}, {pipeline_mode = #tpu.pipeline_mode<synchronous>, transform_indices = @transform_3, window_bounds = array<i64: 384, 64>}, {pipeline_mode = #tpu.pipeline_mode<synchronous>, transform_indices = @transform_4, window_bounds = array<i64: 1, 64>}, {pipeline_mode = #tpu.pipeline_mode<synchronous>, transform_indices = @transform_5, window_bounds = array<i64: 64, 128>}, {pipeline_mode = #tpu.pipeline_mode<synchronous>, transform_indices = @transform_6, window_bounds = array<i64: 1, 128>}, {pipeline_mode = #tpu.pipeline_mode<synchronous>, transform_indices = @transform_7, window_bounds = array<i64: 2, 128>}, {pipeline_mode = #tpu.pipeline_mode<synchronous>, transform_indices = @transform_8, window_bounds = array<i64: 2, 128>}]} {
    %c0 = arith.constant 0 : index
    %c0_0 = arith.constant 0 : index
    %0 = vector.load %arg1[%c0, %c0_0] : memref<2x384xf32, #tpu.memory_space<vmem>>, vector<2x384xf32>
    %1 = arith.mulf %0, %0 : vector<2x384xf32>
    %cst = arith.constant dense<0.000000e+00> : vector<2xf32>
    %2 = vector.multi_reduction <add>, %1, %cst [1] : vector<2x384xf32> to vector<2xf32>
    %3 = vector.shape_cast %2 : vector<2xf32> to vector<2x1xf32>
    %c0_1 = arith.constant 0 : index
    %c0_2 = arith.constant 0 : index
    %4 = vector.load %arg2[%c0_1, %c0_2] : memref<384x128xf32, #tpu.memory_space<vmem>>, vector<384x128xf32>
    %cst_3 = arith.constant dense<0.000000e+00> : vector<2x128xf32>
    %5 = tpu.matmul %0, %4, %cst_3 {dimension_numbers = #tpu.dot_dimension_numbers<[1], [0], [0], [1], [0, 0, 1, 1], [], []>} : vector<2x384xf32>, vector<384x128xf32>, vector<2x128xf32> -> vector<2x128xf32>
    %cst_4 = arith.constant 2.000000e+00 : f32
    %6 = vector.broadcast %cst_4 : f32 to vector<2x128xf32>
    %7 = arith.mulf %6, %5 : vector<2x128xf32>
    %8 = vector.broadcast %3 : vector<2x1xf32> to vector<2x128xf32>
    %9 = arith.subf %8, %7 : vector<2x128xf32>
    %c0_5 = arith.constant 0 : index
    %c0_6 = arith.constant 0 : index
    %10 = vector.load %arg3[%c0_5, %c0_6] : memref<1x128xf32, #tpu.memory_space<vmem>>, vector<1x128xf32>
    %11 = vector.broadcast %10 : vector<1x128xf32> to vector<2x128xf32>
    %12 = arith.addf %9, %11 : vector<2x128xf32>
    %cst_7 = arith.constant 1.000000e+00 : f32
    %13 = vector.broadcast %cst_7 : f32 to vector<2x128xf32>
    %14 = arith.divf %12, %13 : vector<2x128xf32>
    %cst_8 = arith.constant 1.000000e+00 : f32
    %15 = vector.broadcast %cst_8 : f32 to vector<2x128xf32>
    %16 = arith.addf %15, %14 : vector<2x128xf32>
    %cst_9 = arith.constant 1.000000e+00 : f32
    %17 = vector.broadcast %cst_9 : f32 to vector<2x128xf32>
    %18 = arith.divf %17, %16 : vector<2x128xf32>
    %19 = tpu.iota {dimensions = array<i32: 1>} : vector<1x128xi32>
    %c5_i32 = arith.constant 5 : i32
    %20 = vector.broadcast %c5_i32 : i32 to vector<1x128xi32>
    %21 = arith.cmpi slt, %19, %20 : vector<1x128xi32>
    %cst_10 = arith.constant 0.000000e+00 : f32
    %22 = vector.shape_cast %21 : vector<1x128xi1> to vector<1x128xi1>
    %23 = vector.broadcast %22 : vector<1x128xi1> to vector<2x128xi1>
    %24 = vector.broadcast %cst_10 : f32 to vector<2x128xf32>
    %25 = arith.select %23, %18, %24 : vector<2x128xi1>, vector<2x128xf32>
    %cst_11 = arith.constant dense<0.000000e+00> : vector<2xf32>
    %26 = vector.multi_reduction <add>, %25, %cst_11 [1] : vector<2x128xf32> to vector<2xf32>
    %27 = vector.shape_cast %26 : vector<2xf32> to vector<2x1xf32>
    %28 = vector.broadcast %27 : vector<2x1xf32> to vector<2x128xf32>
    %29 = arith.divf %25, %28 : vector<2x128xf32>
    %c0_12 = arith.constant 0 : index
    %c0_13 = arith.constant 0 : index
    %30 = vector.load %arg8[%c0_12, %c0_13] : memref<2x128xf32, #tpu.memory_space<vmem>>, vector<2x128xf32>
    tpu.vector_store %arg8[%c0_12, %c0_13], %29 {strides = array<i32>} : memref<2x128xf32, #tpu.memory_space<vmem>>, vector<2x128xf32>,
    %c0_14 = arith.constant 0 : index
    %c0_15 = arith.constant 0 : index
    %31 = vector.load %arg4[%c0_14, %c0_15] : memref<384x64xf32, #tpu.memory_space<vmem>>, vector<384x64xf32>
    %cst_16 = arith.constant dense<0.000000e+00> : vector<2x64xf32>
    %32 = tpu.matmul %0, %31, %cst_16 {dimension_numbers = #tpu.dot_dimension_numbers<[1], [0], [0], [1], [0, 0, 1, 1], [], []>} : vector<2x384xf32>, vector<384x64xf32>, vector<2x64xf32> -> vector<2x64xf32>
    %c0_17 = arith.constant 0 : index
    %c0_18 = arith.constant 0 : index
    %33 = vector.load %arg5[%c0_17, %c0_18] : memref<1x64xf32, #tpu.memory_space<vmem>>, vector<1x64xf32>
    %34 = vector.broadcast %33 : vector<1x64xf32> to vector<2x64xf32>
    %35 = arith.addf %32, %34 : vector<2x64xf32>
    %cst_19 = arith.constant 0.000000e+00 : f32
    %36 = vector.broadcast %cst_19 : f32 to vector<2x64xf32>
    %37 = arith.maximumf %35, %36 : vector<2x64xf32>
    %c0_20 = arith.constant 0 : index
    %c0_21 = arith.constant 0 : index
    %38 = vector.load %arg6[%c0_20, %c0_21] : memref<64x128xf32, #tpu.memory_space<vmem>>, vector<64x128xf32>
    %cst_22 = arith.constant dense<0.000000e+00> : vector<2x128xf32>
    %39 = tpu.matmul %37, %38, %cst_22 {dimension_numbers = #tpu.dot_dimension_numbers<[1], [0], [0], [1], [0, 0, 1, 1], [], []>} : vector<2x64xf32>, vector<64x128xf32>, vector<2x128xf32> -> vector<2x128xf32>
    %c0_23 = arith.constant 0 : index
    %c0_24 = arith.constant 0 : index
    %40 = vector.load %arg7[%c0_23, %c0_24] : memref<1x128xf32, #tpu.memory_space<vmem>>, vector<1x128xf32>
    %41 = vector.broadcast %40 : vector<1x128xf32> to vector<2x128xf32>
    %42 = arith.addf %39, %41 : vector<2x128xf32>
    %c0_25 = arith.constant 0 : index
    %c0_26 = arith.constant 0 : index
    %43 = vector.load %arg9[%c0_25, %c0_26] : memref<2x128xf32, #tpu.memory_space<vmem>>, vector<2x128xf32>
    tpu.vector_store %arg9[%c0_25, %c0_26], %42 {strides = array<i32>} : memref<2x128xf32, #tpu.memory_space<vmem>>, vector<2x128xf32>,
    return
  }
  func.func @transform_0(%arg0: i32) -> (i32, i32) {
    %c0_i32 = arith.constant 0 : i32
    %c0_i32_0 = arith.constant 0 : i32
    %c0_i32_1 = arith.constant 0 : i32
    return %c0_i32, %c0_i32_0 : i32, i32
  }
  func.func @transform_1(%arg0: i32) -> (i32, i32) {
    %c0_i32 = arith.constant 0 : i32
    %c0_i32_0 = arith.constant 0 : i32
    %c0_i32_1 = arith.constant 0 : i32
    return %c0_i32, %c0_i32_0 : i32, i32
  }
  func.func @transform_2(%arg0: i32) -> (i32, i32) {
    %c0_i32 = arith.constant 0 : i32
    %c0_i32_0 = arith.constant 0 : i32
    %c0_i32_1 = arith.constant 0 : i32
    return %c0_i32, %c0_i32_0 : i32, i32
  }
  func.func @transform_3(%arg0: i32) -> (i32, i32) {
    %c0_i32 = arith.constant 0 : i32
    %c0_i32_0 = arith.constant 0 : i32
    %c0_i32_1 = arith.constant 0 : i32
    return %c0_i32, %c0_i32_0 : i32, i32
  }
  func.func @transform_4(%arg0: i32) -> (i32, i32) {
    %c0_i32 = arith.constant 0 : i32
    %c0_i32_0 = arith.constant 0 : i32
    %c0_i32_1 = arith.constant 0 : i32
    return %c0_i32, %c0_i32_0 : i32, i32
  }
  func.func @transform_5(%arg0: i32) -> (i32, i32) {
    %c0_i32 = arith.constant 0 : i32
    %c0_i32_0 = arith.constant 0 : i32
    %c0_i32_1 = arith.constant 0 : i32
    return %c0_i32, %c0_i32_0 : i32, i32
  }
  func.func @transform_6(%arg0: i32) -> (i32, i32) {
    %c0_i32 = arith.constant 0 : i32
    %c0_i32_0 = arith.constant 0 : i32
    %c0_i32_1 = arith.constant 0 : i32
    return %c0_i32, %c0_i32_0 : i32, i32
  }
  func.func @transform_7(%arg0: i32) -> (i32, i32) {
    %c0_i32 = arith.constant 0 : i32
    %c0_i32_0 = arith.constant 0 : i32
    %c0_i32_1 = arith.constant 0 : i32
    return %c0_i32, %c0_i32_0 : i32, i32
  }
  func.func @transform_8(%arg0: i32) -> (i32, i32) {
    %c0_i32 = arith.constant 0 : i32
    %c0_i32_0 = arith.constant 0 : i32
    %c0_i32_1 = arith.constant 0 : i32
    return %c0_i32, %c0_i32_0 : i32, i32
  }
}

</mosaic_0001>

<bundles_post_ra>
// kernel: forward.2
= control target key start
LH: loop header
LB: loop body
LE: loop exit
PB: predicated region body
PF: predicated region fallthrough
CT: control target
= control target key end

     0   :  { %s1769_s25 = smov 0   ;;  %s1957_s0 = inlined_call_operand.vmem [shape: f32[3,2,128], index: 0, kind: input, shape index: {}]   ;;  %s1958_s1 = inlined_call_operand.vmem [shape: f32[3,128,64], index: 1, kind: input, shape index: {}]   ;;  %s1959_s2 = inlined_call_operand.vmem [shape: f32[3,1,64], index: 2, kind: input, shape index: {}]   ;;  %s1960_s3 = inlined_call_operand.vmem [shape: f32[3,64,128], index: 3, kind: input, shape index: {}]   ;;  %s1961_s4 = inlined_call_operand.vmem [shape: f32[3,1,128], index: 4, kind: input, shape index: {}]   ;;  %s1962_s5 = inlined_call_operand.vmem [shape: f32[3,128,64], index: 5, kind: input, shape index: {}]   ;;  %s1963_s6 = inlined_call_operand.vmem [shape: f32[3,1,64], index: 6, kind: input, shape index: {}]   ;;  %s1964_s7 = inlined_call_operand.vmem [shape: f32[3,64,128], index: 7, kind: input, shape index: {}]   ;;  %s1965_s8 = inlined_call_operand.vmem [shape: f32[3,1,128], index: 8, kind: input, shape index: {}]   ;;  %s1966_s9 = inlined_call_operand.vmem [shape: f32[3,128,128], index: 9, kind: input, shape index: {}]   ;;  %s1967_s10 = inlined_call_operand.vmem [shape: f32[3,1,128], index: 10, kind: input, shape index: {}]   ;;  %s1968_s11 = inlined_call_operand.vmem [shape: f32[2,384], index: 11, kind: output, shape index: {0}]   ;;  %s1969_s12 = inlined_call_operand.vmem [shape: f32[3,2,128], index: 12, kind: output, shape index: {1}]   ;;  %s1970_s13 = inlined_call_operand.vmem [shape: f32[3,2,128], index: 13, kind: output, shape index: {2}]  }
   0x1 LB: > { %s1332_s26 = sadd.s32 4294967295, %s1694_s25   ;;  %p1336_p0 = scmp.ge.s32.totalorder %s1694_s25, 1  ;;  %s1694_s25 = sphi %s1769_s25, %s24_s25  }
   0x2   : > { %p481_p1 = scmp.lt.s32.totalorder %s1694_s25, 4 }
   0x4   : > { %p482_p2 = pnand %p1336_p0, %p481_p1 }
   0x5   : > { %p571_p3 = scmp.lt.s32.totalorder (!%p482_p2), %s1332_s26, 2  ;;  %v1696_v0 = vmov (!%p482_p2), 0.0|0.0   ;;  %vm1697_vm0 = vmmov (!%p482_p2), 0   ;;  %v1698_v1 = vmov (!%p482_p2), 0.0   ;;  %vm737_vm1 = vcmask (!%p482_p2), 523264  }
   0x6   : > { %485 = sbr.rel (%p482_p2) target bundleno = 913 (0x391), region = 64  ;;  %1577 = vmatprep.subr.bf16.mxu0 (!%p482_p2), %v1696_v0  ;;  %1466 = vmatprep.mubr.msk.f32.mxu0 (!%p482_p2), %vm1697_vm0, %v1698_v1  ;;  %vm997_vm2 = vcmask (!%p482_p2), 1041408  }
   0x7   : > { %1601 = vmatprep.subr.bf16.mxu1 (!%p482_p2), %v1696_v0  ;;  %1485 = vmatprep.mubr.msk.f32.mxu1 (!%p482_p2), %vm1697_vm0, %v1698_v1 }
   0xd   : > { %s1972_s26 = smov (!%p571_p3, %s1332_s26), 2 }
   0xe   : > { %s1786_s27 = sshll.u32 %s1972_s26, 7  ;;  %s1361_s14 = sshll.u32 %s1972_s26, 6 }
   0xf   : > { %s1792_s30 = scalar_lea.vmem %s1958_s1, %s1786_s27  ;;  %s1804_s17 = scalar_lea.vmem %s1960_s3, %s1361_s14 }
  0x10   : > { %v628_v2 = vld [vmem:[%s1792_s30] sm:$0xff]  ;;  %v629_v3 = vld [vmem:[%s1792_s30 + $0x8] sm:$0xff]  ;;  %v630_v4 = vld [vmem:[%s1792_s30 + $0x10] sm:$0xff]  ;;  %s1834_s18 = sshll.u32 %s1972_s26, 1  ;;  %s1850_s24 = scalar_lea.vmem %s1966_s9, %s1786_s27 }
  0x11   : > { %v1578_v5 = vpack.c.bf16 %v629_v3, %v628_v2  ;;  %v631_v6 = vld [vmem:[%s1792_s30 + $0x18] sm:$0xff]  ;;  %v632_v8 = vld [vmem:[%s1792_s30 + $0x20] sm:$0xff]  ;;  %v633_v9 = vld [vmem:[%s1792_s30 + $0x28] sm:$0xff]  ;;  %s574_s21 = scalar_lea.vmem %s1957_s0, %s1834_s18  ;;  %s590_s20 = scalar_lea.vmem %s1961_s4, %s1972_s26 }
  0x12   : > { %v1581_v7 = vpack.c.bf16 %v631_v6, %v630_v4  ;;  %v722_v10 = vld [vmem:[%s1804_s17] sm:$0xff]  ;;  %v723_v11 = vld [vmem:[%s1804_s17 + $0x8] sm:$0xff]  ;;  %v724_v12 = vld [vmem:[%s1804_s17 + $0x10] sm:$0xff]  ;;  %v1584_v14 = vpack.c.bf16 %v633_v9, %v632_v8  ;;  %s618_s23 = scalar_lea.vmem %s1968_s11, %s1834_s18  ;;  %s603_s29 = scalar_lea.vmem %s1964_s7, %s1361_s14 }
  0x13   : > { %1579 = vmatpush3.bf16.msra.mxu0 %v1578_v5  ;;  %v725_v13 = vld [vmem:[%s1804_s17 + $0x18] sm:$0xff]  ;;  %v1602_v15 = vpack.c.bf16 %v723_v11, %v722_v10  ;;  %v634_v16 = vld [vmem:[%s1792_s30 + $0x30] sm:$0xff]  ;;  %v726_v19 = vld [vmem:[%s1804_s17 + $0x20] sm:$0xff]  ;;  %s598_s15 = scalar_lea.vmem %s1963_s6, %s1972_s26  ;;  %s622_s14 = scalar_lea.vmem %s1969_s12, %s1834_s18 }
  0x14   : > { %1580 = vmatprep.subr.bf16.mxu0 %v1696_v0  ;;  %v635_v17 = vld [vmem:[%s1792_s30 + $0x38] sm:$0xff]  ;;  %v1605_v18 = vpack.c.bf16 %v725_v13, %v724_v12  ;;  %v727_v20 = vld [vmem:[%s1804_s17 + $0x28] sm:$0xff]  ;;  %v636_v22 = vld [vmem:[%s1792_s30 + $0x40] sm:$0xff] }
  0x15   : > { %1603 = vmatpush3.bf16.msra.mxu1 %v1602_v15  ;;  %v1587_v21 = vpack.c.bf16 %v635_v17, %v634_v16  ;;  %v637_v23 = vld [vmem:[%s1792_s30 + $0x48] sm:$0xff]  ;;  %v1608_v24 = vpack.c.bf16 %v727_v20, %v726_v19  ;;  %v638_v26 = vld [vmem:[%s1792_s30 + $0x50] sm:$0xff]  ;;  %v639_v27 = vld [vmem:[%s1792_s30 + $0x58] sm:$0xff] }
  0x16   : > { %1604 = vmatprep.subr.bf16.mxu1 %v1696_v0  ;;  %v1590_v25 = vpack.c.bf16 %v637_v23, %v636_v22  ;;  %v1593_v28 = vpack.c.bf16 %v639_v27, %v638_v26  ;;  %v640_v29 = vld [vmem:[%s1792_s30 + $0x60] sm:$0xff]  ;;  %v641_v30 = vld [vmem:[%s1792_s30 + $0x68] sm:$0xff]  ;;  %v642_v32 = vld [vmem:[%s1792_s30 + $0x70] sm:$0xff] }
  0x17   : > { %1582 = vmatpush3.bf16.msra.mxu0 %v1581_v7  ;;  %v1596_v31 = vpack.c.bf16 %v641_v30, %v640_v29  ;;  %v643_v33 = vld [vmem:[%s1792_s30 + $0x78] sm:$0xff]  ;;  %v627_v35 = vld [vmem:[%s574_s21] sm:$0x3]  ;;  %v728_v36 = vld [vmem:[%s1804_s17 + $0x30] sm:$0xff]  ;;  %s582_s30 = scalar_lea.vmem %s1959_s2, %s1972_s26  ;;  %s626_s21 = scalar_lea.vmem %s1970_s13, %s1834_s18 }
  0x18   : > { %1583 = vmatprep.subr.bf16.mxu0 %v1696_v0  ;;  %v1599_v34 = vpack.c.bf16 %v643_v33, %v642_v32  ;;  %v729_v37 = vld [vmem:[%s1804_s17 + $0x38] sm:$0xff]  ;;  %v1001_v39 = vld [vmem:[%s1850_s24] sm:$0xff]  ;;  %v1002_v40 = vld [vmem:[%s1850_s24 + $0x8] sm:$0xff]  ;;  %s1882_s17 = scalar_lea.vmem %s1962_s5, %s1786_s27  ;;  %s614_s27 = scalar_lea.vmem %s1967_s10, %s1972_s26 }
  0x19   : > { %1606 = vmatpush3.bf16.msra.mxu1 %v1605_v18  ;;  %v1611_v38 = vpack.c.bf16 %v729_v37, %v728_v36  ;;  %v1650_v41 = vpack.c.bf16 %v1002_v40, %v1001_v39  ;;  %v1003_v42 = vld [vmem:[%s1850_s24 + $0x10] sm:$0xff]  ;;  %v1004_v43 = vld [vmem:[%s1850_s24 + $0x18] sm:$0xff]  ;;  %v1005_v45 = vld [vmem:[%s1850_s24 + $0x20] sm:$0xff] }
  0x1a   : > { %1607 = vmatprep.subr.bf16.mxu1 %v1696_v0  ;;  %v1653_v44 = vpack.c.bf16 %v1004_v43, %v1003_v42  ;;  %v1006_v46 = vld [vmem:[%s1850_s24 + $0x28] sm:$0xff]  ;;  %v1007_v48 = vld [vmem:[%s1850_s24 + $0x30] sm:$0xff]  ;;  %v1008_v49 = vld [vmem:[%s1850_s24 + $0x38] sm:$0xff] }
  0x1b   : > { %1585 = vmatpush3.bf16.msra.mxu0 %v1584_v14  ;;  %v1656_v47 = vpack.c.bf16 %v1006_v46, %v1005_v45  ;;  %v1659_v50 = vpack.c.bf16 %v1008_v49, %v1007_v48  ;;  %v1009_v51 = vld [vmem:[%s1850_s24 + $0x40] sm:$0xff]  ;;  %v1010_v52 = vld [vmem:[%s1850_s24 + $0x48] sm:$0xff]  ;;  %v1011_v54 = vld [vmem:[%s1850_s24 + $0x50] sm:$0xff] }
  0x1c   : > { %1586 = vmatprep.subr.bf16.mxu0 %v1696_v0  ;;  %v1662_v53 = vpack.c.bf16 %v1010_v52, %v1009_v51  ;;  %v1012_v55 = vld [vmem:[%s1850_s24 + $0x58] sm:$0xff]  ;;  %v1013_v57 = vld [vmem:[%s1850_s24 + $0x60] sm:$0xff]  ;;  %v1014_v58 = vld [vmem:[%s1850_s24 + $0x68] sm:$0xff] }
  0x1d   : > { %1609 = vmatpush3.bf16.msra.mxu1 %v1608_v24  ;;  %v1665_v56 = vpack.c.bf16 %v1012_v55, %v1011_v54  ;;  %v1668_v59 = vpack.c.bf16 %v1014_v58, %v1013_v57  ;;  %v1351_v60 = vld [vmem:[%s582_s30] ss:$0 sm:$0xff]  ;;  %v814_v62 = vld [vmem:[%s1882_s17 + $0x8] sm:$0xff]  ;;  %v815_v6 = vld [vmem:[%s1882_s17 + $0x10] sm:$0xff] }
  0x1e   : > { %1610 = vmatprep.subr.bf16.mxu1 %v1696_v0  ;;  %v813_v61 = vld [vmem:[%s1882_s17] sm:$0xff]  ;;  %v816_v7 = vld [vmem:[%s1882_s17 + $0x18] sm:$0xff]  ;;  %v818_v10 = vld [vmem:[%s1882_s17 + $0x28] sm:$0xff] }
  0x1f   : > { %1588 = vmatpush3.bf16.msra.mxu0 %v1587_v21  ;;  %v1614_v4 = vpack.c.bf16 %v814_v62, %v813_v61  ;;  %v1617_v8 = vpack.c.bf16 %v816_v7, %v815_v6  ;;  %v817_v9 = vld [vmem:[%s1882_s17 + $0x20] sm:$0xff]  ;;  %v819_v12 = vld [vmem:[%s1882_s17 + $0x30] sm:$0xff]  ;;  %v820_v13 = vld [vmem:[%s1882_s17 + $0x38] sm:$0xff] }
  0x20   : > { %1589 = vmatprep.subr.bf16.mxu0 %v1696_v0  ;;  %v1620_v11 = vpack.c.bf16 %v818_v10, %v817_v9  ;;  %v1623_v14 = vpack.c.bf16 %v820_v13, %v819_v12  ;;  %v821_v15 = vld [vmem:[%s1882_s17 + $0x40] sm:$0xff]  ;;  %v822_v16 = vld [vmem:[%s1882_s17 + $0x48] sm:$0xff]  ;;  %v823_v18 = vld [vmem:[%s1882_s17 + $0x50] sm:$0xff] }
  0x21   : > { %1612 = vmatpush3.bf16.msra.mxu1 %v1611_v38  ;;  %v1626_v17 = vpack.c.bf16 %v822_v16, %v821_v15  ;;  %v824_v19 = vld [vmem:[%s1882_s17 + $0x58] sm:$0xff]  ;;  %v825_v21 = vld [vmem:[%s1882_s17 + $0x60] sm:$0xff]  ;;  %v826_v22 = vld [vmem:[%s1882_s17 + $0x68] sm:$0xff] }
  0x22   : > { %1613 = vmatprep.subr.bf16.mxu1 %v1696_v0  ;;  %v1629_v20 = vpack.c.bf16 %v824_v19, %v823_v18  ;;  %v1632_v23 = vpack.c.bf16 %v826_v22, %v825_v21  ;;  %v827_v24 = vld [vmem:[%s1882_s17 + $0x70] sm:$0xff]  ;;  %v1352_v30 = vld [vmem:[%s590_s20] ss:$0 sm:$0xff]  ;;  %v908_v38 = vld [vmem:[%s603_s29 + $0x8] sm:$0xff] }
  0x23   : > { %1591 = vmatpush3.bf16.msra.mxu0 %v1590_v25  ;;  %v828_v25 = vld [vmem:[%s1882_s17 + $0x78] sm:$0xff]  ;;  %v1015_v26 = vld [vmem:[%s1850_s24 + $0x70] sm:$0xff]  ;;  %v907_v37 = vld [vmem:[%s603_s29] sm:$0xff] }
  0x24   : > { %1592 = vmatprep.subr.bf16.mxu0 %v1696_v0  ;;  %v1635_v27 = vpack.c.bf16 %v828_v25, %v827_v24  ;;  %v909_v39 = vld [vmem:[%s603_s29 + $0x10] sm:$0xff]  ;;  %v1638_v40 = vpack.c.bf16 %v908_v38, %v907_v37  ;;  %v912_v43 = vld [vmem:[%s603_s29 + $0x28] sm:$0xff]  ;;  %v914_v46 = vld [vmem:[%s603_s29 + $0x38] sm:$0xff] }
  0x25   : > { %v913_v45 = vld [vmem:[%s603_s29 + $0x30] sm:$0xff]  ;;  %v1354_v48 = vld [vmem:[%s598_s15] ss:$0 sm:$0xff] }
  0x26   : > { %v1357_v55 = vld [vmem:[%s614_s27] ss:$0 sm:$0xff] }
  0x27   : > { %1594 = vmatpush3.bf16.msra.mxu0 %v1593_v28  ;;  %v1016_v28 = vld [vmem:[%s1850_s24 + $0x78] sm:$0xff]  ;;  %s606_s24 = scalar_lea.vmem %s1965_s8, %s1972_s26 }
  0x28   : > { %1595 = vmatprep.subr.bf16.mxu0 %v1696_v0  ;;  %v1671_v29 = vpack.c.bf16 %v1016_v28, %v1015_v26  ;;  %v1355_v6 = vld [vmem:[%s606_s24] ss:$0 sm:$0xff] }
  0x2b   : > { %1597 = vmatpush3.bf16.msra.mxu0 %v1596_v31 }
  0x2c   : > { %1598 = vmatprep.subr.bf16.mxu0 %v1696_v0 }
  0x2f   : > { %1600 = vmatpush3.bf16.msra.mxu0 %v1599_v34 }
  0x30   : > { %1649 = vmatprep.subr.bf16.mxu0 %v1696_v0 }
  0x32   : > { %1467 = vmatmul.mubr.f32.vlgmr.msra.gmra.mrb[0].mxu0 %v627_v35 }
  0x33   : > { %1574 = vmatprep.mubr.msk.f32.mxu0 %vm1697_vm0, %v1698_v1  ;;  %1651 = vmatpush3.bf16.msra.mxu0 %v1650_v41  ;;  %v910_v41 = vld [vmem:[%s603_s29 + $0x18] sm:$0xff] }
  0x34   : > { %1652 = vmatprep.subr.bf16.mxu0 %v1696_v0  ;;  %v1641_v42 = vpack.c.bf16 %v910_v41, %v909_v39 }
  0x37   : > { %1654 = vmatpush3.bf16.msra.mxu0 %v1653_v44 }
  0x38   : > { %1655 = vmatprep.subr.bf16.mxu0 %v1696_v0 }
  0x3b   : > { %1657 = vmatpush3.bf16.msra.mxu0 %v1656_v47  ;;  %v1647_v47 = vpack.c.bf16 %v914_v46, %v913_v45 }
  0x3c   : > { %1658 = vmatprep.subr.bf16.mxu0 %v1696_v0 }
  0x3f   : > { %1660 = vmatpush3.bf16.msra.mxu0 %v1659_v50 }
  0x40   : > { %1661 = vmatprep.subr.bf16.mxu0 %v1696_v0 }
  0x43   : > { %1663 = vmatpush3.bf16.msra.mxu0 %v1662_v53 }
  0x44   : > { %1664 = vmatprep.subr.bf16.mxu0 %v1696_v0 }
  0x47   : > { %1666 = vmatpush3.bf16.msra.mxu0 %v1665_v56 }
  0x48   : > { %1667 = vmatprep.subr.bf16.mxu0 %v1696_v0 }
  0x4b   : > { %1669 = vmatpush3.bf16.msra.mxu0 %v1668_v59 }
  0x4c   : > { %1670 = vmatprep.subr.bf16.mxu0 %v1696_v0 }
  0x4f   : > { %1672 = vmatpush3.bf16.msra.mxu0 %v1671_v29 }
 0x105   : > { %v717_v63 = vpop.f32.mrb[0].mxu0 }
 0x106   : > { %v718_v2 = vadd.f32 %v1351_v60, %v717_v63  ;;  %v1468_v3 = vpop.f32.mrb[1].mxu0  ;;  %v1100_v60 = vlaneseq }
 0x108   : > { %v721_v5 = vmax.f32 %v718_v2, 0.0  ;;  %v1101_v61 = vand.u32 127, %v1100_v60 }
 0x10a   : > { %1486 = vmatmul.mubr.msk.f32.vlgmr.msra.gmra.mrb[0].mxu1 %vm737_vm1, %v721_v5  ;;  %vm1102_vm3 = vcmp.lt.s32.totalorder %v1101_v61, 5 }
 0x10b   : > { %1615 = vmatpush3.bf16.msra.mxu1 %v1614_v4  ;;  %1520 = vmatprep.mubr.msk.f32.mxu1 %vm1697_vm0, %v1698_v1 }
 0x10c   : > { %1616 = vmatprep.subr.bf16.mxu1 %v1696_v0 }
 0x10f   : > { %1618 = vmatpush3.bf16.msra.mxu1 %v1617_v8 }
 0x110   : > { %1619 = vmatprep.subr.bf16.mxu1 %v1696_v0 }
 0x113   : > { %1621 = vmatpush3.bf16.msra.mxu1 %v1620_v11 }
 0x114   : > { %1622 = vmatprep.subr.bf16.mxu1 %v1696_v0 }
 0x117   : > { %1624 = vmatpush3.bf16.msra.mxu1 %v1623_v14 }
 0x118   : > { %1625 = vmatprep.subr.bf16.mxu1 %v1696_v0 }
 0x11b   : > { %1627 = vmatpush3.bf16.msra.mxu1 %v1626_v17 }
 0x11c   : > { %1628 = vmatprep.subr.bf16.mxu1 %v1696_v0 }
 0x11f   : > { %1630 = vmatpush3.bf16.msra.mxu1 %v1629_v20 }
 0x120   : > { %1631 = vmatprep.subr.bf16.mxu1 %v1696_v0 }
 0x123   : > { %1633 = vmatpush3.bf16.msra.mxu1 %v1632_v23 }
 0x124   : > { %1634 = vmatprep.subr.bf16.mxu1 %v1696_v0 }
 0x127   : > { %1636 = vmatpush3.bf16.msra.mxu1 %v1635_v27 }
 0x128   : > { %1637 = vmatprep.subr.bf16.mxu1 %v1696_v0 }
 0x1dd   : > { %v807_v31 = vpop.f32.mrb[0].mxu1 }
 0x1de   : > { %v808_v32 = vadd.f32 %v1352_v30, %v807_v31  ;;  %v1487_v33 = vpop.f32.mrb[1].mxu1 }
 0x1e0   : > { %v811_v34 = vmax.f32 %v808_v32, 0.0 }
 0x1e2   : > { %812 = vst [vmem:[%s618_s23] sm:$0x3] %v811_v34  ;;  %1521 = vmatmul.mubr.f32.vlgmr.msra.gmra.mrb[2].mxu1 %v811_v34  ;;  %1575 = vmatmul.mubr.f32.vlgmr.msra.gmra.mrb[2].mxu0 %v811_v34  ;;  %v996_v35 = vmul.f32 %v811_v34, %v811_v34 }
 0x1e3   : > { %1539 = vmatprep.mubr.msk.f32.mxu1 %vm1697_vm0, %v1698_v1  ;;  %1639 = vmatpush3.bf16.msra.mxu1 %v1638_v40  ;;  %v911_v1 = vld [vmem:[%s603_s29 + $0x20] sm:$0xff] }
 0x1e4   : > { %v998_v36 = vsel %vm997_vm2, %v996_v35, 0.0  ;;  %1640 = vmatprep.subr.bf16.mxu1 %v1696_v0  ;;  %v1644_v44 = vpack.c.bf16 %v912_v43, %v911_v1 }
 0x1e5   : > { %999 = vadd.xlane.f32.xlu0 %v998_v36 }
 0x1e7   : > { %1642 = vmatpush3.bf16.msra.mxu1 %v1641_v42 }
 0x1e8   : > { %1643 = vmatprep.subr.bf16.mxu1 %v1696_v0 }
 0x1eb   : > { %1645 = vmatpush3.bf16.msra.mxu1 %v1644_v44 }
 0x1ec   : > { %1646 = vmatprep.subr.bf16.mxu1 %v1696_v0 }
 0x1ef   : > { %1648 = vmatpush3.bf16.msra.mxu1 %v1647_v47 }
 0x272   : > { %v1000_v0 = vpop.xlane.xlu0 %999 }
 0x2b5   : > { %v902_v49 = vpop.f32.mrb[2].mxu1  ;;  %v1083_v50 = vpop.f32.mrb[2].mxu0 }
 0x2b6   : > { %v903_v51 = vadd.f32 %v1354_v48, %v902_v49  ;;  %v1087_v52 = vmul.f32 2.0, %v1083_v50  ;;  %v1522_v53 = vpop.f32.mrb[3].mxu1  ;;  %v1576_v54 = vpop.f32.mrb[3].mxu0 }
 0x2b8   : > { %v906_v56 = vmax.f32 %v903_v51, 0.0  ;;  %v1088_v57 = vsub.f32 %v1000_v0, %v1087_v52 }
 0x2ba   : > { %v1096_v58 = vadd.f32 %v1357_v55, %v1088_v57  ;;  %1540 = vmatmul.mubr.msk.f32.vlgmr.msra.gmra.mrb[4].mxu1 %vm737_vm1, %v906_v56 }
 0x2bc   : > { %v1097_v59 = vadd.f32 1.0, %v1096_v58 }
 0x2be   : > { %1684 = vrcp.f32 %v1097_v59 }
 0x2c8   : > { %v1685_v62 = vpop.eup %1684 }
 0x2c9   : > { %v1105_v63 = vsel %vm1102_vm3, %v1685_v62, 0.0 }
 0x2ca   : > { %v1106_v2 = vsel %vm997_vm2, %v1105_v63, 0.0 }
 0x2cb   : > { %1107 = vadd.xlane.f32.xlu0 %v1106_v2 }
 0x358   : > { %v1108_v3 = vpop.xlane.xlu0 %1107 }
 0x359   : > { %1686 = vrcp.f32 %v1108_v3 }
 0x363   : > { %v1687_v4 = vpop.eup %1686 }
 0x364   : > { %v1110_v5 = vmul.f32 %v1687_v4, %v1105_v63 }
 0x366   : > { %1111 = vst [vmem:[%s626_s21] sm:$0x3] %v1110_v5 }
 0x38d   : > { %v991_v7 = vpop.f32.mrb[4].mxu1 }
 0x38e   : > { %v992_v8 = vadd.f32 %v1355_v6, %v991_v7  ;;  %v1541_v9 = vpop.f32.mrb[5].mxu1 }
 0x390   : > { %995 = vst [vmem:[%s622_s14] sm:$0x3] %v992_v8 }
 0x391 PF: > { %s24_s25 = sadd.s32 1, %s1694_s25  }
 0x392   : > { %p21_p4 = scmp.ge.s32.totalorder %s24_s25, 5  }
 0x394   :  { %23 = sbr.rel (!%p21_p4) target bundleno = 1 (0x1), region = 148 }

// kernel: forward.3
= control target key start
LH: loop header
LB: loop body
LE: loop exit
PB: predicated region body
PF: predicated region fallthrough
CT: control target
= control target key end

     0   :  { %14 = vsyncpa [#allocation3], 0  ;;  %v996_v5 = vmov 0.0|0.0   ;;  %vm997_vm0 = vmmov 0   ;;  %v998_v13 = vmov 0.0   ;;  %v37_v23 = vlaneseq  ;;  %s1454_s0 = inlined_call_operand.vmem [shape: f32[2,384], index: 0, kind: input, shape index: {}]   ;;  %s1455_s1 = inlined_call_operand.vmem [shape: f32[384,128], index: 1, kind: input, shape index: {}]   ;;  %s1456_s2 = inlined_call_operand.vmem [shape: f32[1,128], index: 2, kind: input, shape index: {}]   ;;  %s1457_s3 = inlined_call_operand.vmem [shape: f32[384,64], index: 3, kind: input, shape index: {}]   ;;  %s1458_s4 = inlined_call_operand.vmem [shape: f32[1,64], index: 4, kind: input, shape index: {}]   ;;  %s1459_s5 = inlined_call_operand.vmem [shape: f32[64,128], index: 5, kind: input, shape index: {}]   ;;  %s1460_s6 = inlined_call_operand.vmem [shape: f32[1,128], index: 6, kind: input, shape index: {}]   ;;  %s1461_s7 = inlined_call_operand.hbm [shape: f32[2,128], index: 7, kind: output, shape index: {0}]   ;;  %s1462_s8 = inlined_call_operand.hbm [shape: f32[2,128], index: 8, kind: output, shape index: {1}]  }
   0x1   :  { %v76_v0 = vld [vmem:[%s1455_s1 + $0x80] sm:$0xff]  ;;  %v77_v1 = vld [vmem:[%s1455_s1 + $0x88] sm:$0xff]  ;;  %845 = vmatprep.subr.bf16.mxu1 %v996_v5  ;;  %v78_v6 = vld [vmem:[%s1455_s1 + $0x90] sm:$0xff]  ;;  %756 = vmatprep.mubr.msk.f32.mxu1 %vm997_vm0, %v998_v13  ;;  %v999_v21 = vmov 1983009808   ;;  %vm52_vm1 = vcmask 1041408  }
   0x2   :  { %v60_v2 = vld [vmem:[%s1455_s1] sm:$0xff]  ;;  %v813_v3 = vpack.c.bf16 %v77_v1, %v76_v0  ;;  %v61_v4 = vld [vmem:[%s1455_s1 + $0x8] sm:$0xff]  ;;  %v79_v7 = vld [vmem:[%s1455_s1 + $0x98] sm:$0xff]  ;;  %v35_v22 = vunpack.c.l.s4 %v999_v21  ;;  %v38_v34 = vshrl.u32 %v37_v23, 7 }
   0x3   :  { %v815_v8 = vpack.c.bf16 %v61_v4, %v60_v2  ;;  %v817_v9 = vpack.c.bf16 %v79_v7, %v78_v6  ;;  %v92_v10 = vld [vmem:[%s1455_s1 + $0x100] sm:$0xff]  ;;  %v93_v11 = vld [vmem:[%s1455_s1 + $0x108] sm:$0xff]  ;;  %v62_v12 = vld [vmem:[%s1455_s1 + $0x10] sm:$0xff] }
   0x4   :  { %814 = vmatprep.subr.bf16.mxu0 %v813_v3  ;;  %v846_v14 = vpack.c.bf16 %v93_v11, %v92_v10  ;;  %v63_v15 = vld [vmem:[%s1455_s1 + $0x18] sm:$0xff]  ;;  %v80_v16 = vld [vmem:[%s1455_s1 + $0xa0] sm:$0xff]  ;;  %v81_v17 = vld [vmem:[%s1455_s1 + $0xa8] sm:$0xff]  ;;  %v36_v33 = vunpack.c.0.s8 %v35_v22 }
   0x5   :  { %816 = vmatpush3.bf16.msra.mxu0 %v815_v8  ;;  %v819_v18 = vpack.c.bf16 %v63_v15, %v62_v12  ;;  %v94_v19 = vld [vmem:[%s1455_s1 + $0x110] sm:$0xff]  ;;  %v95_v20 = vld [vmem:[%s1455_s1 + $0x118] sm:$0xff]  ;;  %v821_v24 = vpack.c.bf16 %v81_v17, %v80_v16  ;;  %v64_v26 = vld [vmem:[%s1455_s1 + $0x20] sm:$0xff] }
   0x6   :  { %818 = vmatprep.subr.bf16.mxu0 %v817_v9  ;;  %847 = vmatpush3.bf16.msra.mxu1 %v846_v14  ;;  %v849_v25 = vpack.c.bf16 %v95_v20, %v94_v19  ;;  %v65_v27 = vld [vmem:[%s1455_s1 + $0x28] sm:$0xff]  ;;  %v82_v28 = vld [vmem:[%s1455_s1 + $0xb0] sm:$0xff]  ;;  %v83_v29 = vld [vmem:[%s1455_s1 + $0xb8] sm:$0xff]  ;;  %v1131_v44 = vsub.s32 %v36_v33, %v38_v34 }
   0x7   :  { %848 = vmatprep.subr.bf16.mxu1 %v996_v5  ;;  %v96_v30 = vld [vmem:[%s1455_s1 + $0x120] sm:$0xff]  ;;  %v97_v31 = vld [vmem:[%s1455_s1 + $0x128] sm:$0xff]  ;;  %v823_v32 = vpack.c.bf16 %v65_v27, %v64_v26  ;;  %v825_v35 = vpack.c.bf16 %v83_v29, %v82_v28  ;;  %v66_v37 = vld [vmem:[%s1455_s1 + $0x30] sm:$0xff] }
   0x8   :  { %v852_v36 = vpack.c.bf16 %v97_v31, %v96_v30  ;;  %v67_v38 = vld [vmem:[%s1455_s1 + $0x38] sm:$0xff]  ;;  %v84_v39 = vld [vmem:[%s1455_s1 + $0xc0] sm:$0xff]  ;;  %v85_v40 = vld [vmem:[%s1455_s1 + $0xc8] sm:$0xff] }
   0x9   :  { %820 = vmatpush3.bf16.msra.mxu0 %v819_v18  ;;  %v98_v41 = vld [vmem:[%s1455_s1 + $0x130] sm:$0xff]  ;;  %v99_v42 = vld [vmem:[%s1455_s1 + $0x138] sm:$0xff]  ;;  %v827_v43 = vpack.c.bf16 %v67_v38, %v66_v37  ;;  %v829_v45 = vpack.c.bf16 %v85_v40, %v84_v39  ;;  %v68_v47 = vld [vmem:[%s1455_s1 + $0x40] sm:$0xff] }
   0xa   :  { %822 = vmatprep.subr.bf16.mxu0 %v821_v24  ;;  %850 = vmatpush3.bf16.msra.mxu1 %v849_v25  ;;  %v855_v46 = vpack.c.bf16 %v99_v42, %v98_v41  ;;  %v69_v48 = vld [vmem:[%s1455_s1 + $0x48] sm:$0xff]  ;;  %v86_v49 = vld [vmem:[%s1455_s1 + $0xd0] sm:$0xff]  ;;  %v87_v50 = vld [vmem:[%s1455_s1 + $0xd8] sm:$0xff] }
   0xb   :  { %851 = vmatprep.subr.bf16.mxu1 %v996_v5  ;;  %v100_v51 = vld [vmem:[%s1455_s1 + $0x140] sm:$0xff]  ;;  %v101_v52 = vld [vmem:[%s1455_s1 + $0x148] sm:$0xff]  ;;  %v831_v54 = vpack.c.bf16 %v69_v48, %v68_v47  ;;  %v833_v57 = vpack.c.bf16 %v87_v50, %v86_v49  ;;  %v70_v59 = vld [vmem:[%s1455_s1 + $0x50] sm:$0xff] }
   0xc   :  { %v1155_v53 = vld [vmem:[%s1454_s0] sm:$0x3f]  ;;  %v858_v58 = vpack.c.bf16 %v101_v52, %v100_v51  ;;  %v71_v60 = vld [vmem:[%s1455_s1 + $0x58] sm:$0xff]  ;;  %v89_v62 = vld [vmem:[%s1455_s1 + $0xe8] sm:$0xff] }
   0xd   :  { %824 = vmatpush3.bf16.msra.mxu0 %v823_v32  ;;  %v1159_v55 = vrot.slane %v1155_v53, %v1131_v44  ;;  %v31_v56 = vmul.f32 %v1155_v53, %v1155_v53  ;;  %v88_v61 = vld [vmem:[%s1455_s1 + $0xe0] sm:$0xff]  ;;  %v102_v63 = vld [vmem:[%s1455_s1 + $0x150] sm:$0xff]  ;;  %v103_v0 = vld [vmem:[%s1455_s1 + $0x158] sm:$0xff]  ;;  %v835_v4 = vpack.c.bf16 %v71_v60, %v70_v59  ;;  %v109_v33 = vcombine.high %v1155_v53, %v1155_v53 }
   0xe   :  { %826 = vmatprep.subr.bf16.mxu0 %v825_v35  ;;  %853 = vmatpush3.bf16.msra.mxu1 %v852_v36  ;;  %v837_v7 = vpack.c.bf16 %v89_v62, %v88_v61  ;;  %v861_v8 = vpack.c.bf16 %v103_v0, %v102_v63  ;;  %v72_v9 = vld [vmem:[%s1455_s1 + $0x60] sm:$0xff]  ;;  %v73_v10 = vld [vmem:[%s1455_s1 + $0x68] sm:$0xff]  ;;  %v90_v11 = vld [vmem:[%s1455_s1 + $0xf0] sm:$0xff] }
   0xf   :  { %854 = vmatprep.subr.bf16.mxu1 %v996_v5  ;;  %v1184_v1 = vcombine.high %v1159_v55, %v1159_v55  ;;  %v33_v2 = vcombine.high %v31_v56, %v31_v56  ;;  %v40_v3 = vrot.slane %v31_v56, %v1131_v44  ;;  %v91_v15 = vld [vmem:[%s1455_s1 + $0xf8] sm:$0xff]  ;;  %v104_v16 = vld [vmem:[%s1455_s1 + $0x160] sm:$0xff]  ;;  %v105_v17 = vld [vmem:[%s1455_s1 + $0x168] sm:$0xff]  ;;  %v839_v20 = vpack.c.bf16 %v73_v10, %v72_v9 }
  0x10   :  { %v841_v22 = vpack.c.bf16 %v91_v15, %v90_v11  ;;  %v864_v24 = vpack.c.bf16 %v105_v17, %v104_v16  ;;  %v74_v25 = vld [vmem:[%s1455_s1 + $0x70] sm:$0xff]  ;;  %v75_v26 = vld [vmem:[%s1455_s1 + $0x78] sm:$0xff]  ;;  %v309_v29 = vld [vmem:[%s1457_s3 + $0x80] sm:$0xff] }
  0x11   :  { %828 = vmatpush3.bf16.msra.mxu0 %v827_v43  ;;  %192 = vmatprep.mubr.f32.mxu0 %v1184_v1  ;;  %v47_v6 = vrot.slane %v33_v2, %v1131_v44  ;;  %v48_v12 = vcombine.high %v40_v3, %v40_v3  ;;  %v53_v14 = vsel %vm52_vm1, %v40_v3, 0.0  ;;  %v106_v27 = vld [vmem:[%s1455_s1 + $0x170] sm:$0xff]  ;;  %v107_v28 = vld [vmem:[%s1455_s1 + $0x178] sm:$0xff]  ;;  %v310_v30 = vld [vmem:[%s1457_s3 + $0x88] sm:$0xff]  ;;  %v843_v32 = vpack.c.bf16 %v75_v26, %v74_v25 }
  0x12   :  { %830 = vmatprep.subr.bf16.mxu0 %v829_v45  ;;  %856 = vmatpush3.bf16.msra.mxu1 %v855_v46  ;;  %v867_v34 = vpack.c.bf16 %v107_v28, %v106_v27  ;;  %v869_v35 = vpack.c.bf16 %v310_v30, %v309_v29  ;;  %v293_v36 = vld [vmem:[%s1457_s3] sm:$0xff]  ;;  %v294_v37 = vld [vmem:[%s1457_s3 + $0x8] sm:$0xff]  ;;  %v311_v38 = vld [vmem:[%s1457_s3 + $0x90] sm:$0xff]  ;;  %v1252_v43 = vrot.slane %v109_v33, %v1131_v44 }
  0x13   :  { %857 = vmatprep.subr.bf16.mxu1 %v996_v5  ;;  %v54_v18 = vsel %vm52_vm1, %v48_v12, 0.0  ;;  %v56_v19 = vsel %vm52_vm1, %v47_v6, 0.0  ;;  %v312_v39 = vld [vmem:[%s1457_s3 + $0x98] sm:$0xff]  ;;  %v325_v40 = vld [vmem:[%s1457_s3 + $0x100] sm:$0xff]  ;;  %v326_v41 = vld [vmem:[%s1457_s3 + $0x108] sm:$0xff]  ;;  %v871_v42 = vpack.c.bf16 %v294_v37, %v293_v36 }
  0x14   :  { %v55_v21 = vadd.f32 %v54_v18, %v53_v14 }
  0x15   :  { %832 = vmatpush3.bf16.msra.mxu0 %v831_v54 }
  0x16   :  { %834 = vmatprep.subr.bf16.mxu0 %v833_v57  ;;  %859 = vmatpush3.bf16.msra.mxu1 %v858_v58  ;;  %v57_v31 = vadd.f32 %v56_v19, %v55_v21 }
  0x17   :  { %860 = vmatprep.subr.bf16.mxu1 %v996_v5 }
  0x18   :  { %58 = vadd.xlane.f32.xlu0 %v57_v31 }
  0x19   :  { %836 = vmatpush3.bf16.msra.mxu0 %v835_v4 }
  0x1a   :  { %838 = vmatprep.subr.bf16.mxu0 %v837_v7  ;;  %862 = vmatpush3.bf16.msra.mxu1 %v861_v8 }
  0x1b   :  { %863 = vmatprep.subr.bf16.mxu1 %v996_v5 }
  0x1d   :  { %840 = vmatpush3.bf16.msra.mxu0 %v839_v20 }
  0x1e   :  { %842 = vmatprep.subr.bf16.mxu0 %v841_v22  ;;  %865 = vmatpush3.bf16.msra.mxu1 %v864_v24 }
  0x1f   :  { %866 = vmatprep.subr.bf16.mxu1 %v996_v5 }
  0x21   :  { %844 = vmatpush3.bf16.msra.mxu0 %v843_v32 }
  0x22   :  { %15 = vsyncpa [#allocation5], 0  ;;  %868 = vmatpush3.bf16.msra.mxu1 %v867_v34  ;;  %870 = vmatprep.subr.bf16.mxu0 %v869_v35  ;;  %v873_v45 = vpack.c.bf16 %v312_v39, %v311_v38  ;;  %v295_v46 = vld [vmem:[%s1457_s3 + $0x10] sm:$0xff]  ;;  %v296_v47 = vld [vmem:[%s1457_s3 + $0x18] sm:$0xff]  ;;  %v902_v48 = vpack.c.bf16 %v326_v41, %v325_v40  ;;  %vm504_vm3 = vcmask 523264  }
  0x23   :  { %v313_v49 = vld [vmem:[%s1457_s3 + $0xa0] sm:$0xff]  ;;  %901 = vmatprep.subr.bf16.mxu1 %v996_v5  ;;  %v314_v44 = vld [vmem:[%s1457_s3 + $0xa8] sm:$0xff]  ;;  %v327_v50 = vld [vmem:[%s1457_s3 + $0x110] sm:$0xff]  ;;  %v875_v52 = vpack.c.bf16 %v296_v47, %v295_v46 }
  0x24   :  { %v328_v51 = vld [vmem:[%s1457_s3 + $0x118] sm:$0xff]  ;;  %193 = vmatmul.mubr.f32.vlgmr.msra.gmra.mrb[0].mxu0 %v1159_v55  ;;  %v877_v53 = vpack.c.bf16 %v314_v44, %v313_v49  ;;  %v297_v54 = vld [vmem:[%s1457_s3 + $0x20] sm:$0xff]  ;;  %v298_v56 = vld [vmem:[%s1457_s3 + $0x28] sm:$0xff] }
  0x25   :  { %872 = vmatpush3.bf16.msra.mxu0 %v871_v42  ;;  %757 = vmatmul.mubr.f32.vlgmr.msra.gmra.mrb[0].mxu1 %v1252_v43  ;;  %v905_v57 = vpack.c.bf16 %v328_v51, %v327_v50  ;;  %v315_v58 = vld [vmem:[%s1457_s3 + $0xb0] sm:$0xff]  ;;  %v316_v59 = vld [vmem:[%s1457_s3 + $0xb8] sm:$0xff]  ;;  %v329_v60 = vld [vmem:[%s1457_s3 + $0x120] sm:$0xff]  ;;  %v879_v62 = vpack.c.bf16 %v298_v56, %v297_v54 }
  0x26   :  { %874 = vmatprep.subr.bf16.mxu0 %v873_v45  ;;  %903 = vmatpush3.bf16.msra.mxu1 %v902_v48  ;;  %v330_v61 = vld [vmem:[%s1457_s3 + $0x128] sm:$0xff]  ;;  %v881_v63 = vpack.c.bf16 %v316_v59, %v315_v58  ;;  %v299_v0 = vld [vmem:[%s1457_s3 + $0x30] sm:$0xff]  ;;  %v300_v2 = vld [vmem:[%s1457_s3 + $0x38] sm:$0xff] }
  0x27   :  { %904 = vmatprep.subr.bf16.mxu1 %v996_v5  ;;  %412 = vmatprep.mubr.f32.mxu0 %v1184_v1  ;;  %v908_v3 = vpack.c.bf16 %v330_v61, %v329_v60  ;;  %v317_v1 = vld [vmem:[%s1457_s3 + $0xc0] sm:$0xff]  ;;  %v318_v4 = vld [vmem:[%s1457_s3 + $0xc8] sm:$0xff]  ;;  %v331_v6 = vld [vmem:[%s1457_s3 + $0x130] sm:$0xff]  ;;  %v883_v8 = vpack.c.bf16 %v300_v2, %v299_v0 }
  0x28   :  { %791 = vmatprep.mubr.msk.f32.mxu1 %vm997_vm0, %v998_v13  ;;  %v332_v7 = vld [vmem:[%s1457_s3 + $0x138] sm:$0xff]  ;;  %v885_v9 = vpack.c.bf16 %v318_v4, %v317_v1  ;;  %v301_v10 = vld [vmem:[%s1457_s3 + $0x40] sm:$0xff]  ;;  %v302_v11 = vld [vmem:[%s1457_s3 + $0x48] sm:$0xff]  ;;  %v282_v4 = vand.u32 127, %v37_v23 }
  0x29   :  { %876 = vmatpush3.bf16.msra.mxu0 %v875_v52  ;;  %v911_v12 = vpack.c.bf16 %v332_v7, %v331_v6  ;;  %v319_v14 = vld [vmem:[%s1457_s3 + $0xd0] sm:$0xff]  ;;  %v320_v15 = vld [vmem:[%s1457_s3 + $0xd8] sm:$0xff]  ;;  %v333_v16 = vld [vmem:[%s1457_s3 + $0x140] sm:$0xff]  ;;  %v887_v18 = vpack.c.bf16 %v302_v11, %v301_v10 }
  0x2a   :  { %878 = vmatprep.subr.bf16.mxu0 %v877_v53  ;;  %906 = vmatpush3.bf16.msra.mxu1 %v905_v57  ;;  %v334_v17 = vld [vmem:[%s1457_s3 + $0x148] sm:$0xff]  ;;  %v889_v19 = vpack.c.bf16 %v320_v15, %v319_v14  ;;  %v303_v20 = vld [vmem:[%s1457_s3 + $0x50] sm:$0xff]  ;;  %v304_v21 = vld [vmem:[%s1457_s3 + $0x58] sm:$0xff]  ;;  %vm283_vm2 = vcmp.lt.s32.totalorder %v282_v4, 5 }
  0x2b   :  { %907 = vmatprep.subr.bf16.mxu1 %v996_v5  ;;  %v914_v22 = vpack.c.bf16 %v334_v17, %v333_v16  ;;  %v321_v24 = vld [vmem:[%s1457_s3 + $0xe0] sm:$0xff]  ;;  %v322_v25 = vld [vmem:[%s1457_s3 + $0xe8] sm:$0xff]  ;;  %v335_v26 = vld [vmem:[%s1457_s3 + $0x150] sm:$0xff]  ;;  %v891_v28 = vpack.c.bf16 %v304_v21, %v303_v20 }
  0x2c   :  { %v336_v27 = vld [vmem:[%s1457_s3 + $0x158] sm:$0xff]  ;;  %v893_v29 = vpack.c.bf16 %v322_v25, %v321_v24  ;;  %v305_v30 = vld [vmem:[%s1457_s3 + $0x60] sm:$0xff]  ;;  %v306_v31 = vld [vmem:[%s1457_s3 + $0x68] sm:$0xff] }
  0x2d   :  { %880 = vmatpush3.bf16.msra.mxu0 %v879_v62  ;;  %v917_v32 = vpack.c.bf16 %v336_v27, %v335_v26  ;;  %v323_v33 = vld [vmem:[%s1457_s3 + $0xf0] sm:$0xff]  ;;  %v324_v34 = vld [vmem:[%s1457_s3 + $0xf8] sm:$0xff]  ;;  %v337_v35 = vld [vmem:[%s1457_s3 + $0x160] sm:$0xff]  ;;  %v895_v37 = vpack.c.bf16 %v306_v31, %v305_v30 }
  0x2e   :  { %882 = vmatprep.subr.bf16.mxu0 %v881_v63  ;;  %909 = vmatpush3.bf16.msra.mxu1 %v908_v3  ;;  %v338_v36 = vld [vmem:[%s1457_s3 + $0x168] sm:$0xff]  ;;  %v897_v38 = vpack.c.bf16 %v324_v34, %v323_v33  ;;  %v307_v39 = vld [vmem:[%s1457_s3 + $0x70] sm:$0xff]  ;;  %v308_v40 = vld [vmem:[%s1457_s3 + $0x78] sm:$0xff] }
  0x2f   :  { %910 = vmatprep.subr.bf16.mxu1 %v996_v5  ;;  %v920_v41 = vpack.c.bf16 %v338_v36, %v337_v35  ;;  %v339_v42 = vld [vmem:[%s1457_s3 + $0x170] sm:$0xff]  ;;  %v340_v45 = vld [vmem:[%s1457_s3 + $0x178] sm:$0xff]  ;;  %v899_v46 = vpack.c.bf16 %v308_v40, %v307_v39  ;;  %v489_v48 = vld [vmem:[%s1459_s5] sm:$0xff] }
  0x30   :  { %v923_v47 = vpack.c.bf16 %v340_v45, %v339_v42  ;;  %v490_v49 = vld [vmem:[%s1459_s5 + $0x8] sm:$0xff]  ;;  %v493_v50 = vld [vmem:[%s1459_s5 + $0x20] sm:$0xff]  ;;  %v495_v53 = vld [vmem:[%s1459_s5 + $0x30] sm:$0xff] }
  0x31   :  { %884 = vmatpush3.bf16.msra.mxu0 %v883_v8  ;;  %v926_v44 = vpack.c.bf16 %v490_v49, %v489_v48  ;;  %v494_v51 = vld [vmem:[%s1459_s5 + $0x28] sm:$0xff]  ;;  %v496_v54 = vld [vmem:[%s1459_s5 + $0x38] sm:$0xff]  ;;  %v608_v11 = vld [vmem:[%s1458_s4] ss:$0 sm:$0xff] }
  0x32   :  { %886 = vmatprep.subr.bf16.mxu0 %v885_v9  ;;  %912 = vmatpush3.bf16.msra.mxu1 %v911_v12  ;;  %v932_v52 = vpack.c.bf16 %v494_v51, %v493_v50  ;;  %v935_v56 = vpack.c.bf16 %v496_v54, %v495_v53 }
  0x33   :  { %913 = vmatprep.subr.bf16.mxu1 %v996_v5 }
  0x35   :  { %888 = vmatpush3.bf16.msra.mxu0 %v887_v18 }
  0x36   :  { %890 = vmatprep.subr.bf16.mxu0 %v889_v19  ;;  %915 = vmatpush3.bf16.msra.mxu1 %v914_v22 }
  0x37   :  { %916 = vmatprep.subr.bf16.mxu1 %v996_v5 }
  0x39   :  { %892 = vmatpush3.bf16.msra.mxu0 %v891_v28 }
  0x3a   :  { %894 = vmatprep.subr.bf16.mxu0 %v893_v29  ;;  %918 = vmatpush3.bf16.msra.mxu1 %v917_v32 }
  0x3b   :  { %919 = vmatprep.subr.bf16.mxu1 %v996_v5 }
  0x3d   :  { %896 = vmatpush3.bf16.msra.mxu0 %v895_v37 }
  0x3e   :  { %898 = vmatprep.subr.bf16.mxu0 %v897_v38  ;;  %921 = vmatpush3.bf16.msra.mxu1 %v920_v41 }
  0x3f   :  { %922 = vmatprep.subr.bf16.mxu1 %v996_v5 }
  0x41   :  { %900 = vmatpush3.bf16.msra.mxu0 %v899_v46 }
  0x42   :  { %924 = vmatpush3.bf16.msra.mxu1 %v923_v47  ;;  %925 = vmatprep.subr.bf16.mxu0 %v996_v5 }
  0x44   :  { %413 = vmatmul.mubr.f32.vlgmr.msra.gmra.mrb[2].mxu0 %v1159_v55  ;;  %v491_v55 = vld [vmem:[%s1459_s5 + $0x10] sm:$0xff] }
  0x45   :  { %792 = vmatmul.mubr.f32.vlgmr.msra.gmra.mrb[2].mxu1 %v1252_v43  ;;  %810 = vmatprep.mubr.msk.f32.mxu0 %vm997_vm0, %v998_v13  ;;  %v492_v13 = vld [vmem:[%s1459_s5 + $0x18] sm:$0xff] }
  0x46   :  { %927 = vmatpush3.bf16.msra.mxu0 %v926_v44  ;;  %v929_v43 = vpack.c.bf16 %v492_v13, %v491_v55 }
  0x47   :  { %928 = vmatprep.subr.bf16.mxu0 %v996_v5 }
  0x4a   :  { %930 = vmatpush3.bf16.msra.mxu0 %v929_v43 }
  0x4b   :  { %931 = vmatprep.subr.bf16.mxu0 %v996_v5 }
  0x4e   :  { %933 = vmatpush3.bf16.msra.mxu0 %v932_v52 }
  0x4f   :  { %934 = vmatprep.subr.bf16.mxu0 %v996_v5  ;;  %v607_v5 = vld [vmem:[%s1456_s2] ss:$0 sm:$0xff]  ;;  %s1000_s2 = smov [#allocation2]  }
  0x50   :  { %s585_s0 = sshll.u32 %s1000_s2, 4  ;;  %s586_s0 = int_to_ptr.vmem [resolvable:$true] %s585_s0 }
  0x51   :  { %s948_s30 = scalar_lea.vmem %s586_s0, 32  ;;  %p953_p1 = scmp.lt.s32.totalorder %s586_s0, %s586_s0 }
  0x52   :  { %936 = vmatpush3.bf16.msra.mxu0 %v935_v56  ;;  %p949_p0 = scmp.ne.s32.totalorder %s586_s0, %s948_s30  ;;  %p954_p2 = scmp.lt.s32.totalorder %s948_s30, %s948_s30 }
  0x54   :  { %p955_p3 = por %p954_p2, %p953_p1 }
  0x56   :  { %p956_p4 = pnand %p955_p3, %p949_p0 }
  0xa5   :  { %v59_v63 = vpop.xlane.xlu0 %58 }
  0xf7   :  { %v643_v57 = vpop.f32.mrb[0].mxu0 }
  0xf8   :  { %v644_v58 = vpop.f32.mrb[1].mxu0  ;;  %v264_v59 = vpop.f32.mrb[0].mxu1 }
  0xf9   :  { %v645_v60 = vadd.f32 %v644_v58, %v643_v57  ;;  %v758_v61 = vpop.f32.mrb[1].mxu1 }
  0xfb   :  { %v265_v62 = vadd.f32 %v645_v60, %v264_v59 }
  0xfd   :  { %v268_v0 = vmul.f32 2.0, %v265_v62 }
  0xff   :  { %v269_v2 = vsub.f32 %v59_v63, %v268_v0 }
 0x101   :  { %v277_v3 = vadd.f32 %v607_v5, %v269_v2 }
 0x103   :  { %v278_v1 = vadd.f32 1.0, %v277_v3 }
 0x105   :  { %944 = vrcp.f32 %v278_v1 }
 0x10f   :  { %v945_v6 = vpop.eup %944 }
 0x110   :  { %v286_v7 = vsel %vm283_vm2, %v945_v6, 0.0 }
 0x111   :  { %v287_v8 = vsel %vm52_vm1, %v286_v7, 0.0 }
 0x112   :  { %288 = vadd.xlane.f32.xlu0 %v287_v8 }
 0x117   :  { %v695_v9 = vpop.f32.mrb[2].mxu0 }
 0x118   :  { %v696_v10 = vpop.f32.mrb[3].mxu0  ;;  %v484_v12 = vpop.f32.mrb[2].mxu1 }
 0x119   :  { %v697_v14 = vadd.f32 %v696_v10, %v695_v9  ;;  %v793_v15 = vpop.f32.mrb[3].mxu1 }
 0x11b   :  { %v415_v16 = vadd.f32 %v697_v14, %v608_v11 }
 0x11d   :  { %v485_v17 = vadd.f32 %v484_v12, %v415_v16 }
 0x11f   :  { %v488_v18 = vmax.f32 %v485_v17, 0.0 }
 0x121   :  { %811 = vmatmul.mubr.msk.f32.vlgmr.msra.gmra.mrb[4].mxu0 %vm504_vm3, %v488_v18 }
 0x19f   :  { %v289_v23 = vpop.xlane.xlu0 %288 }
 0x1a0   :  { %946 = vrcp.f32 %v289_v23 }
 0x1aa   :  { %v947_v19 = vpop.eup %946 }
 0x1ab   :  { %v291_v20 = vmul.f32 %v947_v19, %v286_v7 }
 0x1ad   :  { %292 = vst [vmem:[#allocation2] sm:$0x3] %v291_v20 }
 0x1ae   :  { %959 = shalt.err (!%p956_p4)
}
 0x1af   :  { %s960_s10 = scalar_lea.hbm %s1461_s7, 32 }
 0x1b0   :  { %p961_p5 = scmp.ne.s32.totalorder %s1461_s7, %s960_s10  ;;  %p964_p6 = scmp.lt.u32.totalorder %s960_s10, %s1461_s7 }
 0x1b2   :  { %p966_p7 = pnand %p964_p6, %p961_p5 }
 0x1b4   :  { %969 = shalt.err (!%p966_p7)
}
 0x1b5   :  { %588 = dma.vmem_to_hbm [thread:$0]  %s586_s0, 32, %s1461_s7, [#allocation3]   ;;  %v609_v21 = vld [vmem:[%s1460_s6] ss:$0 sm:$0xff] }
 0x1b6   :  { %s1001_s17 = smov [#allocation4]  }
 0x1b7   :  { %s595_s18 = sshll.u32 %s1001_s17, 4  ;;  %s596_s18 = int_to_ptr.vmem [resolvable:$true] %s595_s18 }
 0x1b8   :  { %s970_s19 = scalar_lea.vmem %s596_s18, 32  ;;  %p975_p9 = scmp.lt.s32.totalorder %s596_s18, %s596_s18 }
 0x1b9   :  { %p971_p8 = scmp.ne.s32.totalorder %s596_s18, %s970_s19  ;;  %p976_p10 = scmp.lt.s32.totalorder %s970_s19, %s970_s19 }
 0x1bb   :  { %p977_p11 = por %p976_p10, %p975_p9 }
 0x1bd   :  { %p978_p12 = pnand %p977_p11, %p971_p8 }
 0x1f4   :  { %v574_v22 = vpop.f32.mrb[4].mxu0 }
 0x1f5   :  { %v575_v24 = vadd.f32 %v609_v21, %v574_v22  ;;  %v812_v25 = vpop.f32.mrb[5].mxu0 }
 0x1f7   :  { %578 = vst [vmem:[#allocation4] sm:$0x3] %v575_v24 }
 0x1f8   :  { %981 = shalt.err (!%p978_p12)
}
 0x1f9   :  { %s982_s21 = scalar_lea.hbm %s1462_s8, 32 }
 0x1fa   :  { %p983_p13 = scmp.ne.s32.totalorder %s1462_s8, %s982_s21  ;;  %p986_p0 = scmp.lt.u32.totalorder %s982_s21, %s1462_s8 }
 0x1fc   :  { %p988_p1 = pnand %p986_p0, %p983_p13 }
 0x1fe   :  { %991 = shalt.err (!%p988_p1)
}
 0x1ff   :  { %598 = dma.vmem_to_hbm [thread:$0]  %s596_s18, 32, %s1462_s8, [#allocation5]  }
 0x200   :  { %992 = dma.done.wait [#allocation3], 32  }
 0x201   :  { %993 = vsyncadd [#allocation3], 4294967264 }
 0x202   :  { %994 = dma.done.wait [#allocation5], 32  }
 0x203   :  { %995 = vsyncadd [#allocation5], 4294967264 }
 0x204   :  { %605 = vsyncpa [#allocation3], 1 }
 0x205   :  { %606 = vsyncpa [#allocation5], 1 }

</bundles_post_ra>
